<compile_context>
chip_gen: v6e
topology: v6e:2x2x1
jax: 0.10.0
libtpu: 0.0.40
codegen_flags: <defaults>
</compile_context>

<pallas_src>
import math

import jax
import jax.numpy as jnp
import numpy as np
from jax.experimental import pallas as pl
from jax.experimental.pallas import tpu as pltpu


def _round_up(a, b):
    return (a + b - 1) // b * b


def _pick_tile(want, n_pad):
    """Largest 128-multiple <= want that divides n_pad (n_pad is a 128-multiple)."""
    t = min(_round_up(max(want, 128), 128), n_pad)
    while n_pad % t:
        t -= 128
    return t


# ----------------------------------------------------------------------------
# Pass 1: Lorentz Q/K projections (query time column pre-negated).
# ----------------------------------------------------------------------------
def _qk_proj_kernel(scal_ref, x_ref, wq_ref, bq_ref, wk_ref, bk_ref,
                    qneg_ref, k_ref):
    x = x_ref[...]                                           # [TN, D] bf16
    col = jax.lax.broadcasted_iota(jnp.int32, x.shape, 1)
    is_time = col == 0                                       # column-0 mask

    def lorentz_linear(w_ref, b_ref, exp_scale, negate_time):
        # nn.Linear (eval mode: dropout = identity, nonlin = None): h = x W^T + b
        h = jax.lax.dot_general(x, w_ref[...], (((1,), (1,)), ((), ())),
                                preferred_element_type=jnp.float32)
        h = h + b_ref[...]                                   # f32 elementwise
        # time coordinate / space part without lane-unaligned [:,0:1] / [:,1:]
        h_time = jnp.sum(jnp.where(is_time, h, 0.0), axis=-1, keepdims=True)
        h_space = jnp.where(is_time, 0.0, h)
        time = jax.nn.sigmoid(h_time) * exp_scale + 1.1
        sq = jnp.maximum(jnp.sum(h_space * h_space, axis=-1, keepdims=True),
                         1e-8)
        scale = (time * time - 1.0) / sq
        space = h_space * jnp.sqrt(scale)
        t_out = -time if negate_time else time               # fuse cinner sign
        return jnp.where(is_time, t_out, space)

    qneg_ref[...] = lorentz_linear(wq_ref, bq_ref, scal_ref[0],
                                   True).astype(qneg_ref.dtype)
    k_ref[...] = lorentz_linear(wk_ref, bk_ref, scal_ref[1],
                                False).astype(k_ref.dtype)


# ----------------------------------------------------------------------------
# Pass 2: flash-style masked attention aggregation + Lorentz renormalization.
# ----------------------------------------------------------------------------
def _agg_kernel(scal_ref, qneg_ref, k_ref, xv_ref, adj_ref, out_ref, acc_ref):
    ki = pl.program_id(1)

    @pl.when(ki == 0)
    def _init():
        acc_ref[...] = jnp.zeros_like(acc_ref)

    c1 = scal_ref[0]          # 2 / scale
    c0 = scal_ref[1]          # 2 / scale + bias

    # Lorentz cinner over the whole tile pair: query time column is already
    # negated, so a single full-D MXU contraction gives -q_t k_t + <q_s, k_s>.
    cin = jax.lax.dot_general(qneg_ref[...], k_ref[...],
                              (((1,), (1,)), ((), ())),
                              preferred_element_type=jnp.float32)   # [TQ,TK] f32
    att = jax.nn.sigmoid(cin * c1 + c0)
    att = att * adj_ref[...].astype(jnp.float32)             # 0/1 bf16 mask, exact
    acc_ref[...] += jax.lax.dot_general(att.astype(xv_ref.dtype), xv_ref[...],
                                        (((1,), (0,)), ((), ())),
                                        preferred_element_type=jnp.float32)

    @pl.when(ki == pl.num_programs(1) - 1)
    def _finalize():
        s = acc_ref[...]
        col = jax.lax.broadcasted_iota(jnp.int32, s.shape, 1)
        # Lorentz inner <s, s>_L = -s0^2 + sum_{d>0} s_d^2
        inner = jnp.sum(jnp.where(col == 0, -s, s) * s, axis=-1, keepdims=True)
        inv = jax.lax.rsqrt(jnp.maximum(jnp.abs(inner), 1e-8))   # EUP, no divide
        out_ref[...] = (s * inv).astype(out_ref.dtype)


# ----------------------------------------------------------------------------
# Wrapper
# ----------------------------------------------------------------------------
def lorentz_agg(x, adj, wq, bq, wk, bk,
                q_log_scale, k_log_scale, att_scale, att_bias,
                *, block_q=256, block_k=512, block_n=256):
    """LorentzAgg.forward (use_att=True, local_agg=True), eval mode.

    x: [N, D] node features; adj: [N, N] dense 0/1 adjacency;
    wq/wk: [D, D] PyTorch-layout Linear weights (h = x @ W.T + b); bq/bk: [D].
    q/k_log_scale = LorentzLinear.scale, att_scale/att_bias = LorentzAgg.scale/bias.
    """
    n, d = x.shape
    f32, bf16 = jnp.float32, jnp.bfloat16

    n_pad = _round_up(n, 128)
    tq = _pick_tile(block_q, n_pad)
    tk = _pick_tile(block_k, n_pad)
    tn = _pick_tile(block_n, n_pad)
    pad = n_pad - n

    # Pad to tile multiples; padded adj rows/cols are zero so they contribute
    # nothing, and padded query rows are sliced off at the end.
    x_f32 = jnp.pad(x.astype(f32), ((0, pad), (0, 0)))
    x_bf16 = x_f32.astype(bf16)                               # MXU operand feed
    adj_bf16 = jnp.pad(adj, ((0, pad), (0, pad))).astype(bf16)  # 0/1, exact in bf16

    # Derived scalar constants, kept in SMEM inside the kernels.
    proj_scal = jnp.stack([jnp.exp(jnp.asarray(q_log_scale, f32)),
                           jnp.exp(jnp.asarray(k_log_scale, f32))])
    c1 = 2.0 / jnp.asarray(att_scale, f32)
    agg_scal = jnp.stack([c1, c1 + jnp.asarray(att_bias, f32)])

    wq_bf16 = wq.astype(bf16)
    wk_bf16 = wk.astype(bf16)
    bq_f32 = bq.reshape(1, d).astype(f32)
    bk_f32 = bk.reshape(1, d).astype(f32)

    smem_spec = pl.BlockSpec(memory_space=pltpu.MemorySpace.SMEM)

    # ---- Pass 1: Q/K Lorentz projections, computed once over node tiles. ----
    qneg, kproj = pl.pallas_call(
        _qk_proj_kernel,
        out_shape=(jax.ShapeDtypeStruct((n_pad, d), bf16),
                   jax.ShapeDtypeStruct((n_pad, d), bf16)),
        grid=(n_pad // tn,),
        in_specs=[
            smem_spec,                                        # exp(scale) q/k
            pl.BlockSpec((tn, d), lambda i: (i, 0)),          # x
            pl.BlockSpec((d, d), lambda i: (0, 0)),           # wq
            pl.BlockSpec((1, d), lambda i: (0, 0)),           # bq
            pl.BlockSpec((d, d), lambda i: (0, 0)),           # wk
            pl.BlockSpec((1, d), lambda i: (0, 0)),           # bk
        ],
        out_specs=(pl.BlockSpec((tn, d), lambda i: (i, 0)),
                   pl.BlockSpec((tn, d), lambda i: (i, 0))),
        compiler_params=pltpu.CompilerParams(
            dimension_semantics=("parallel",)),
    )(proj_scal, x_bf16, wq_bf16, bq_f32, wk_bf16, bk_f32)

    # ---- Pass 2: flash-style masked-attention aggregation + renorm. ----
    grid = (n_pad // tq, n_pad // tk)
    # double-buffered input tiles + f32 accumulator, with 3x headroom
    vmem_est = 2 * (tq * tk * 2 + (tq + 2 * tk) * d * 2 + tq * d * 4) + tq * d * 4
    vmem_limit = int(min(96 * 2**20, max(32 * 2**20, 3 * vmem_est)))

    out_pad = pl.pallas_call(
        _agg_kernel,
        out_shape=jax.ShapeDtypeStruct((n_pad, d), f32),
        grid=grid,
        in_specs=[
            smem_spec,                                            # c1, c0
            pl.BlockSpec((tq, d), lambda qi, ki: (qi, 0)),        # q (neg time)
            pl.BlockSpec((tk, d), lambda qi, ki: (ki, 0)),        # k
            pl.BlockSpec((tk, d), lambda qi, ki: (ki, 0)),        # x values
            pl.BlockSpec((tq, tk), lambda qi, ki: (qi, ki)),      # adj mask (bf16)
        ],
        out_specs=pl.BlockSpec((tq, d), lambda qi, ki: (qi, 0)),
        scratch_shapes=[pltpu.VMEM((tq, d), jnp.float32)],
        compiler_params=pltpu.CompilerParams(
            dimension_semantics=("parallel", "arbitrary"),
            vmem_limit_bytes=vmem_limit),
    )(agg_scal, qneg, kproj, x_bf16, adj_bf16)

    return out_pad[:n]


# ----------------------------------------------------------------------------
# Pure-JAX reference (torch semantics; MXU operands fed at bf16 exactly like
# the kernel / XLA's default TPU matmul precision, accumulation in f32).
# ----------------------------------------------------------------------------
def _reference(x, adj, wq, bq, wk, bk, q_log_scale, k_log_scale,
               att_scale, att_bias):
    bf16, f32 = jnp.bfloat16, jnp.float32

    def ll(w, b, log_scale):
        h = jnp.dot(x.astype(bf16), w.T.astype(bf16),
                    preferred_element_type=f32) + b.reshape(1, -1)
        time = jax.nn.sigmoid(h[:, 0:1]) * jnp.exp(log_scale) + 1.1
        narrow = h[:, 1:]
        sq = jnp.maximum(jnp.sum(narrow * narrow, -1, keepdims=True), 1e-8)
        scale = (time * time - 1.0) / sq
        return jnp.concatenate([time, narrow * jnp.sqrt(scale)], -1)

    q = ll(wq, bq, q_log_scale)
    k = ll(wk, bk, k_log_scale)
    qm = q.at[:, 0].multiply(-1.0)
    cin = jnp.dot(qm.astype(bf16), k.astype(bf16).T, preferred_element_type=f32)
    att = 2.0 + 2.0 * cin
    att = jax.nn.sigmoid(att / att_scale + att_bias) * adj
    s = jnp.dot(att.astype(bf16), x.astype(bf16), preferred_element_type=f32)
    inner = -s[:, 0:1] ** 2 + jnp.sum(s[:, 1:] ** 2, -1, keepdims=True)
    denom = jnp.sqrt(jnp.maximum(jnp.abs(inner), 1e-8))
    return s / denom


if __name__ == "__main__":
    N, D = 500, 16   # nodes, features (N deliberately not a tile multiple)

    key = jax.random.PRNGKey(0)
    k1, k2, k3, k4 = jax.random.split(key, 4)

    x = jax.random.normal(k1, (N, D), jnp.float32)
    adj = (jax.random.uniform(k2, (N, N)) > 0.7).astype(jnp.float32)
    adj = jnp.minimum(adj + jnp.eye(N, dtype=jnp.float32), 1.0)   # self loops

    # LorentzLinear init: uniform(-stdv, stdv), column 0 zeroed, zero bias.
    stdv = 1.0 / math.sqrt(D)
    wq = jax.random.uniform(k3, (D, D), jnp.float32, -stdv, stdv).at[:, 0].set(0.0)
    wk = jax.random.uniform(k4, (D, D), jnp.float32, -stdv, stdv).at[:, 0].set(0.0)
    bq = jnp.zeros((D,), jnp.float32)
    bk = jnp.zeros((D,), jnp.float32)

    q_log_scale = jnp.float32(math.log(10.0))   # LorentzLinear.scale init
    k_log_scale = jnp.float32(math.log(10.0))
    att_scale = jnp.float32(math.sqrt(D))       # LorentzAgg.scale init
    att_bias = jnp.float32(20.0)                # LorentzAgg.bias init

    # Small tiles here so the test exercises multi-tile accumulation over the
    # key axis and the "parallel" query axis (grid = (4, 4) after padding).
    out = lorentz_agg(x, adj, wq, bq, wk, bk,
                      q_log_scale, k_log_scale, att_scale, att_bias,
                      block_q=128, block_k=128, block_n=128)
    out = jax.block_until_ready(out)

    ref = jax.block_until_ready(
        _reference(x, adj, wq, bq, wk, bk,
                   q_log_scale, k_log_scale, att_scale, att_bias))
    np.testing.assert_allclose(np.asarray(out), np.asarray(ref),
                               rtol=1e-3, atol=1e-3)
    print("KERNEL_OK")
</pallas_src>

<mosaic_0001>
module attributes {stable_mosaic.version = 11 : i64} {
  func.func @_qk_proj_kernel(%arg0: i32, %arg1: memref<2xf32, #tpu.memory_space<smem>>, %arg2: memref<128x16xbf16, #tpu.memory_space<vmem>>, %arg3: memref<16x16xbf16, #tpu.memory_space<vmem>>, %arg4: memref<1x16xf32, #tpu.memory_space<vmem>>, %arg5: memref<16x16xbf16, #tpu.memory_space<vmem>>, %arg6: memref<1x16xf32, #tpu.memory_space<vmem>>, %arg7: memref<128x16xbf16, #tpu.memory_space<vmem>>, %arg8: memref<128x16xbf16, #tpu.memory_space<vmem>>) attributes {dimension_semantics = [#tpu.dimension_semantics<parallel>], iteration_bounds = array<i64: 4>, scalar_prefetch = 0 : i64, scratch_operands = 0 : i64, tpu.core_type = #tpu.core_type<tc>, window_params = [{transform_indices = @transform_0, window_bounds = array<i64: 2>}, {transform_indices = @transform_1, window_bounds = array<i64: 128, 16>}, {pipeline_mode = #tpu.pipeline_mode<synchronous>, transform_indices = @transform_2, window_bounds = array<i64: 16, 16>}, {pipeline_mode = #tpu.pipeline_mode<synchronous>, transform_indices = @transform_3, window_bounds = array<i64: 1, 16>}, {pipeline_mode = #tpu.pipeline_mode<synchronous>, transform_indices = @transform_4, window_bounds = array<i64: 16, 16>}, {pipeline_mode = #tpu.pipeline_mode<synchronous>, transform_indices = @transform_5, window_bounds = array<i64: 1, 16>}, {transform_indices = @transform_6, window_bounds = array<i64: 128, 16>}, {transform_indices = @transform_7, window_bounds = array<i64: 128, 16>}]} {
    %c0 = arith.constant 0 : index
    %c0_0 = arith.constant 0 : index
    %0 = vector.load %arg2[%c0, %c0_0] : memref<128x16xbf16, #tpu.memory_space<vmem>>, vector<128x16xbf16>
    %1 = tpu.iota {dimensions = array<i32: 1>} : vector<128x16xi32>
    %c0_i32 = arith.constant 0 : i32
    %2 = vector.broadcast %c0_i32 : i32 to vector<128x16xi32>
    %3 = arith.cmpi eq, %1, %2 : vector<128x16xi32>
    %c0_1 = arith.constant 0 : index
    %4 = memref.load %arg1[%c0_1] : memref<2xf32, #tpu.memory_space<smem>>
    %c0_2 = arith.constant 0 : index
    %c0_3 = arith.constant 0 : index
    %5 = vector.load %arg3[%c0_2, %c0_3] : memref<16x16xbf16, #tpu.memory_space<vmem>>, vector<16x16xbf16>
    %cst = arith.constant dense<0.000000e+00> : vector<128x16xf32>
    %6 = tpu.matmul %0, %5, %cst {dimension_numbers = #tpu.dot_dimension_numbers<[1], [1], [0], [0], [0, 0, 1, 0], [], []>} : vector<128x16xbf16>, vector<16x16xbf16>, vector<128x16xf32> -> vector<128x16xf32>
    %c0_4 = arith.constant 0 : index
    %c0_5 = arith.constant 0 : index
    %7 = vector.load %arg4[%c0_4, %c0_5] : memref<1x16xf32, #tpu.memory_space<vmem>>, vector<1x16xf32>
    %8 = vector.broadcast %7 : vector<1x16xf32> to vector<128x16xf32>
    %9 = arith.addf %6, %8 : vector<128x16xf32>
    %cst_6 = arith.constant 0.000000e+00 : f32
    %10 = vector.broadcast %cst_6 : f32 to vector<128x16xf32>
    %11 = arith.select %3, %9, %10 : vector<128x16xi1>, vector<128x16xf32>
    %cst_7 = arith.constant dense<0.000000e+00> : vector<128xf32>
    %12 = vector.multi_reduction <add>, %11, %cst_7 [1] : vector<128x16xf32> to vector<128xf32>
    %13 = vector.shape_cast %12 : vector<128xf32> to vector<128x1xf32>
    %cst_8 = arith.constant 0.000000e+00 : f32
    %14 = vector.broadcast %cst_8 : f32 to vector<128x16xf32>
    %15 = arith.select %3, %14, %9 : vector<128x16xi1>, vector<128x16xf32>
    %16 = arith.negf %13 : vector<128x1xf32>
    %17 = math.exp %16 : vector<128x1xf32>
    %cst_9 = arith.constant 1.000000e+00 : f32
    %18 = vector.broadcast %cst_9 : f32 to vector<128x1xf32>
    %19 = arith.addf %18, %17 : vector<128x1xf32>
    %20 = arith.divf %18, %19 : vector<128x1xf32>
    %21 = vector.broadcast %4 : f32 to vector<128x1xf32>
    %22 = arith.mulf %20, %21 : vector<128x1xf32>
    %cst_10 = arith.constant 1.100000e+00 : f32
    %23 = vector.broadcast %cst_10 : f32 to vector<128x1xf32>
    %24 = arith.addf %22, %23 : vector<128x1xf32>
    %25 = arith.mulf %15, %15 : vector<128x16xf32>
    %cst_11 = arith.constant dense<0.000000e+00> : vector<128xf32>
    %26 = vector.multi_reduction <add>, %25, %cst_11 [1] : vector<128x16xf32> to vector<128xf32>
    %27 = vector.shape_cast %26 : vector<128xf32> to vector<128x1xf32>
    %cst_12 = arith.constant 9.99999993E-9 : f32
    %28 = vector.broadcast %cst_12 : f32 to vector<128x1xf32>
    %29 = arith.maximumf %27, %28 : vector<128x1xf32>
    %30 = arith.mulf %24, %24 : vector<128x1xf32>
    %cst_13 = arith.constant 1.000000e+00 : f32
    %31 = vector.broadcast %cst_13 : f32 to vector<128x1xf32>
    %32 = arith.subf %30, %31 : vector<128x1xf32>
    %33 = arith.divf %32, %29 : vector<128x1xf32>
    %34 = math.sqrt %33 : vector<128x1xf32>
    %35 = vector.broadcast %34 : vector<128x1xf32> to vector<128x16xf32>
    %36 = arith.mulf %15, %35 : vector<128x16xf32>
    %cst_14 = arith.constant 0.000000e+00 : f32
    %37 = vector.broadcast %cst_14 : f32 to vector<128x1xf32>
    %38 = arith.subf %37, %24 : vector<128x1xf32>
    %39 = vector.shape_cast %38 : vector<128x1xf32> to vector<128x1xf32>
    %40 = vector.broadcast %39 : vector<128x1xf32> to vector<128x16xf32>
    %41 = arith.select %3, %40, %36 : vector<128x16xi1>, vector<128x16xf32>
    %42 = arith.truncf %41 : vector<128x16xf32> to vector<128x16xbf16>
    %c0_15 = arith.constant 0 : index
    %c0_16 = arith.constant 0 : index
    %43 = vector.load %arg7[%c0_15, %c0_16] : memref<128x16xbf16, #tpu.memory_space<vmem>>, vector<128x16xbf16>
    tpu.vector_store %arg7[%c0_15, %c0_16], %42 {strides = array<i32>} : memref<128x16xbf16, #tpu.memory_space<vmem>>, vector<128x16xbf16>,
    %c1 = arith.constant 1 : index
    %44 = memref.load %arg1[%c1] : memref<2xf32, #tpu.memory_space<smem>>
    %c0_17 = arith.constant 0 : index
    %c0_18 = arith.constant 0 : index
    %45 = vector.load %arg5[%c0_17, %c0_18] : memref<16x16xbf16, #tpu.memory_space<vmem>>, vector<16x16xbf16>
    %cst_19 = arith.constant dense<0.000000e+00> : vector<128x16xf32>
    %46 = tpu.matmul %0, %45, %cst_19 {dimension_numbers = #tpu.dot_dimension_numbers<[1], [1], [0], [0], [0, 0, 1, 0], [], []>} : vector<128x16xbf16>, vector<16x16xbf16>, vector<128x16xf32> -> vector<128x16xf32>
    %c0_20 = arith.constant 0 : index
    %c0_21 = arith.constant 0 : index
    %47 = vector.load %arg6[%c0_20, %c0_21] : memref<1x16xf32, #tpu.memory_space<vmem>>, vector<1x16xf32>
    %48 = vector.broadcast %47 : vector<1x16xf32> to vector<128x16xf32>
    %49 = arith.addf %46, %48 : vector<128x16xf32>
    %cst_22 = arith.constant 0.000000e+00 : f32
    %50 = vector.broadcast %cst_22 : f32 to vector<128x16xf32>
    %51 = arith.select %3, %49, %50 : vector<128x16xi1>, vector<128x16xf32>
    %cst_23 = arith.constant dense<0.000000e+00> : vector<128xf32>
    %52 = vector.multi_reduction <add>, %51, %cst_23 [1] : vector<128x16xf32> to vector<128xf32>
    %53 = vector.shape_cast %52 : vector<128xf32> to vector<128x1xf32>
    %cst_24 = arith.constant 0.000000e+00 : f32
    %54 = vector.broadcast %cst_24 : f32 to vector<128x16xf32>
    %55 = arith.select %3, %54, %49 : vector<128x16xi1>, vector<128x16xf32>
    %56 = arith.negf %53 : vector<128x1xf32>
    %57 = math.exp %56 : vector<128x1xf32>
    %cst_25 = arith.constant 1.000000e+00 : f32
    %58 = vector.broadcast %cst_25 : f32 to vector<128x1xf32>
    %59 = arith.addf %58, %57 : vector<128x1xf32>
    %60 = arith.divf %58, %59 : vector<128x1xf32>
    %61 = vector.broadcast %44 : f32 to vector<128x1xf32>
    %62 = arith.mulf %60, %61 : vector<128x1xf32>
    %cst_26 = arith.constant 1.100000e+00 : f32
    %63 = vector.broadcast %cst_26 : f32 to vector<128x1xf32>
    %64 = arith.addf %62, %63 : vector<128x1xf32>
    %65 = arith.mulf %55, %55 : vector<128x16xf32>
    %cst_27 = arith.constant dense<0.000000e+00> : vector<128xf32>
    %66 = vector.multi_reduction <add>, %65, %cst_27 [1] : vector<128x16xf32> to vector<128xf32>
    %67 = vector.shape_cast %66 : vector<128xf32> to vector<128x1xf32>
    %cst_28 = arith.constant 9.99999993E-9 : f32
    %68 = vector.broadcast %cst_28 : f32 to vector<128x1xf32>
    %69 = arith.maximumf %67, %68 : vector<128x1xf32>
    %70 = arith.mulf %64, %64 : vector<128x1xf32>
    %cst_29 = arith.constant 1.000000e+00 : f32
    %71 = vector.broadcast %cst_29 : f32 to vector<128x1xf32>
    %72 = arith.subf %70, %71 : vector<128x1xf32>
    %73 = arith.divf %72, %69 : vector<128x1xf32>
    %74 = math.sqrt %73 : vector<128x1xf32>
    %75 = vector.broadcast %74 : vector<128x1xf32> to vector<128x16xf32>
    %76 = arith.mulf %55, %75 : vector<128x16xf32>
    %77 = vector.shape_cast %64 : vector<128x1xf32> to vector<128x1xf32>
    %78 = vector.broadcast %77 : vector<128x1xf32> to vector<128x16xf32>
    %79 = arith.select %3, %78, %76 : vector<128x16xi1>, vector<128x16xf32>
    %80 = arith.truncf %79 : vector<128x16xf32> to vector<128x16xbf16>
    %c0_30 = arith.constant 0 : index
    %c0_31 = arith.constant 0 : index
    %81 = vector.load %arg8[%c0_30, %c0_31] : memref<128x16xbf16, #tpu.memory_space<vmem>>, vector<128x16xbf16>
    tpu.vector_store %arg8[%c0_30, %c0_31], %80 {strides = array<i32>} : memref<128x16xbf16, #tpu.memory_space<vmem>>, vector<128x16xbf16>,
    return
  }
  func.func @transform_0(%arg0: i32) -> i32 {
    %c0_i32 = arith.constant 0 : i32
    %c0_i32_0 = arith.constant 0 : i32
    return %c0_i32 : i32
  }
  func.func @transform_1(%arg0: i32) -> (i32, i32) {
    %c0_i32 = arith.constant 0 : i32
    %c0_i32_0 = arith.constant 0 : i32
    return %arg0, %c0_i32 : i32, i32
  }
  func.func @transform_2(%arg0: i32) -> (i32, i32) {
    %c0_i32 = arith.constant 0 : i32
    %c0_i32_0 = arith.constant 0 : i32
    %c0_i32_1 = arith.constant 0 : i32
    return %c0_i32, %c0_i32_0 : i32, i32
  }
  func.func @transform_3(%arg0: i32) -> (i32, i32) {
    %c0_i32 = arith.constant 0 : i32
    %c0_i32_0 = arith.constant 0 : i32
    %c0_i32_1 = arith.constant 0 : i32
    return %c0_i32, %c0_i32_0 : i32, i32
  }
  func.func @transform_4(%arg0: i32) -> (i32, i32) {
    %c0_i32 = arith.constant 0 : i32
    %c0_i32_0 = arith.constant 0 : i32
    %c0_i32_1 = arith.constant 0 : i32
    return %c0_i32, %c0_i32_0 : i32, i32
  }
  func.func @transform_5(%arg0: i32) -> (i32, i32) {
    %c0_i32 = arith.constant 0 : i32
    %c0_i32_0 = arith.constant 0 : i32
    %c0_i32_1 = arith.constant 0 : i32
    return %c0_i32, %c0_i32_0 : i32, i32
  }
  func.func @transform_6(%arg0: i32) -> (i32, i32) {
    %c0_i32 = arith.constant 0 : i32
    %c0_i32_0 = arith.constant 0 : i32
    return %arg0, %c0_i32 : i32, i32
  }
  func.func @transform_7(%arg0: i32) -> (i32, i32) {
    %c0_i32 = arith.constant 0 : i32
    %c0_i32_0 = arith.constant 0 : i32
    return %arg0, %c0_i32 : i32, i32
  }
}

</mosaic_0001>

<bundles_post_ra>
// kernel: tpu_custom_call.1
= control target key start
LH: loop header
LB: loop body
LE: loop exit
PB: predicated region body
PF: predicated region fallthrough
CT: control target
= control target key end

     0   :  { %13 = vsyncpa [#allocation3], 0  ;;  %s2479_s24 = smov 0   ;;  %s3772_s0 = inlined_call_operand.vmem [shape: f32[2], index: 0, kind: input, shape index: {}]   ;;  %s3773_s1 = inlined_call_operand.vmem [shape: bf16[512,16], index: 1, kind: input, shape index: {}]   ;;  %s3774_s2 = inlined_call_operand.vmem [shape: bf16[16,16], index: 2, kind: input, shape index: {}]   ;;  %s3775_s3 = inlined_call_operand.vmem [shape: f32[1,16], index: 3, kind: input, shape index: {}]   ;;  %s3776_s4 = inlined_call_operand.vmem [shape: bf16[16,16], index: 4, kind: input, shape index: {}]   ;;  %s3777_s5 = inlined_call_operand.vmem [shape: f32[1,16], index: 5, kind: input, shape index: {}]   ;;  %s3778_s6 = inlined_call_operand.vmem [shape: bf16[512,16], index: 6, kind: output, shape index: {0}]   ;;  %s3779_s7 = inlined_call_operand.vmem [shape: bf16[512,16], index: 7, kind: output, shape index: {1}]  }
   0x1 LB: > { %s1898_s25 = sadd.s32 4294967295, %s2436_s24   ;;  %p1900_p0 = scmp.ge.s32.totalorder %s2436_s24, 1  ;;  %s2436_s24 = sphi %s2479_s24, %s19_s24  }
   0x2   : > { %p207_p1 = scmp.lt.s32.totalorder %s2436_s24, 5  ;;  %s220_s28 = sshll.u32 %s3772_s0, 4  ;;  %s221_s28 = int_to_ptr.vmem [resolvable:$true] %s220_s28 }
   0x3   : > { %p2494_p3 = scmp.eq.s32.totalorder %s1898_s25, 0  ;;  %s2411_s8 = scalar_lea.vmem %s221_s28, 16 }
   0x4   : > { %p2490_p2 = pnand %p1900_p0, %p207_p1  ;;  %p2412_p6 = scmp.ne.s32.totalorder %s221_s28, %s2411_s8 }
   0x5   : > { %p2419_p10 = scmp.lt.s32.totalorder %s221_s28, %s221_s28  ;;  %p2420_p11 = scmp.lt.s32.totalorder %s2411_s8, %s2411_s8 }
   0x6   : > { %p2130_p4 = pneg %p2490_p2 }
   0x7   : > { %p2421_p12 = por %p2420_p11, %p2419_p10 }
   0x8   : > { %p2131_p5 = pnand %p2494_p3, %p2130_p4 }
   0xa   : > { %p2413_p7 = pneg %p2131_p5 }
   0xc   : > { %p2414_p8 = pnand %p2413_p7, %p2412_p6 }
   0xe   : > { %p2415_p9 = pneg %p2414_p8 }
  0x10   : > { %p2422_p13 = pnand %p2421_p12, %p2415_p9 }
  0x12   : > { %2425 = shalt.err (!%p2422_p13)
}
  0x13   : > { %s2438_s9 = smov [#allocation2]   ;;  %254 = sbr.rel (%p2490_p2) target bundleno = 586 (0x24a), region = 44 }
  0x14   : > { %2133 = dma.vmem_to_smem (!%p2131_p5), %s221_s28, 16, %s2438_s9, [#allocation3]  }
  0x18   : > { %2431 = dma.done.wait (%p2494_p3), [#allocation3], 16  }
  0x19   : > { %2433 = vsyncadd (%p2494_p3), [#allocation3], 4294967280 }
  0x1a   : > { %260 = sfence }
  0x1b   : > { %v2145_v0 = vld [vmem:[%s3774_s2] sm:$0xff]   ;;  %vm385_vm0 = vcmask 130048   ;;  %s1905_s14 = sshll.u32 %s1898_s25, 4  ;;  %v327_v12 = vlaneseq  ;;  %s1977_s23 = sld [smem:[#allocation2 + $0x1]]  ;;  %vm1087_vm6 = vcmask 125952  }
  0x1c   : > { %v2146_v1 = vld [vmem:[%s3776_s4] sm:$0xff]   ;;  %2124 = vmatprep.subr.msk.bf16.mxu0 %vm385_vm0, %v2145_v0  ;;  %v411_v2 = vsel %vm385_vm0, %v2145_v0, 0  ;;  %p293_p0 = scmp.lt.s32.totalorder %s1905_s14, 63  ;;  %s330_s25 = sld [smem:[#allocation2]] }
  0x1d   : > { %2125 = vmatprep.subr.msk.bf16.mxu1 %vm385_vm0, %v2146_v1  ;;  %2089 = vmatpush3.bf16.xpose.msra.mxu0 %v411_v2  ;;  %v1120_v3 = vsel %vm385_vm0, %v2146_v1, 0  ;;  %v2540_v13 = vand.u32 127, %v327_v12  ;;  %v2545_v14 = vld [vmem:[%s3775_s3] ss:$0 sm:$0xff] }
  0x1e   : > { %2107 = vmatpush3.bf16.xpose.msra.mxu1 %v1120_v3  ;;  %s3816_s14 = smov (!%p293_p0, %s1905_s14), 63  ;;  %v2550_v15 = vld [vmem:[%s3777_s5] ss:$0 sm:$0xff] }
  0x1f   : > { %s2518_s15 = sshll.u32 %s3816_s14, 2  ;;  %vm329_vm1 = vcmp.eq.s32.totalorder %v2540_v13, 0 }
  0x20   : > { %s296_s18 = scalar_lea.vmem %s3773_s1, %s2518_s15  ;;  %s3054_s28 = scalar_lea.vmem %s3779_s7, %s2518_s15 }
  0x21   : > { %v2147_v4 = vld [vmem:[%s296_s18] sm:$0xff]   ;;  %v2148_v5 = vld [vmem:[%s296_s18 + $0x8] sm:$0xff]   ;;  %v2149_v6 = vld [vmem:[%s296_s18 + $0x10] sm:$0xff]   ;;  %s3067_s8 = scalar_lea.vmem %s3778_s6, %s2518_s15 }
  0x22   : > { %2090 = vmatprep.mubr.msk.bf16.mxu0 %vm385_vm0, %v2147_v4  ;;  %2108 = vmatprep.mubr.msk.bf16.mxu1 %vm385_vm0, %v2147_v4  ;;  %v2150_v7 = vld [vmem:[%s296_s18 + $0x18] sm:$0xff]   ;;  %v2151_v8 = vld [vmem:[%s296_s18 + $0x20] sm:$0xff]   ;;  %v2152_v9 = vld [vmem:[%s296_s18 + $0x28] sm:$0xff]  }
  0x23   : > { %v2153_v10 = vld [vmem:[%s296_s18 + $0x30] sm:$0xff]   ;;  %v2154_v11 = vld [vmem:[%s296_s18 + $0x38] sm:$0xff]  }
  0x24   : > { %2091 = vmatmul.mubr.msk.bf16.vlgmr.msra.gmra.mxu0 %vm385_vm0, %v2148_v5 }
  0x25   : > { %2109 = vmatmul.mubr.msk.bf16.vlgmr.msra.gmra.mxu1 %vm385_vm0, %v2148_v5  ;;  %2094 = vmatprep.mubr.msk.bf16.mxu0 %vm385_vm0, %v2149_v6 }
  0x26   : > { %2112 = vmatprep.mubr.msk.bf16.mxu1 %vm385_vm0, %v2149_v6 }
  0x2c   : > { %2095 = vmatmul.mubr.msk.bf16.gmra.mxu0 %vm385_vm0, %v2150_v7 }
  0x2d   : > { %2113 = vmatmul.mubr.msk.bf16.gmra.mxu1 %vm385_vm0, %v2150_v7  ;;  %2098 = vmatprep.mubr.msk.bf16.mxu0 %vm385_vm0, %v2151_v8 }
  0x2e   : > { %2116 = vmatprep.mubr.msk.bf16.mxu1 %vm385_vm0, %v2151_v8 }
  0x34   : > { %2099 = vmatmul.mubr.msk.bf16.gmra.mxu0 %vm385_vm0, %v2152_v9 }
  0x35   : > { %2117 = vmatmul.mubr.msk.bf16.gmra.mxu1 %vm385_vm0, %v2152_v9  ;;  %2102 = vmatprep.mubr.msk.bf16.mxu0 %vm385_vm0, %v2153_v10 }
  0x36   : > { %2120 = vmatprep.mubr.msk.bf16.mxu1 %vm385_vm0, %v2153_v10 }
  0x3c   : > { %2103 = vmatmul.mubr.msk.bf16.gmra.mxu0 %vm385_vm0, %v2154_v11 }
  0x3d   : > { %2121 = vmatmul.mubr.msk.bf16.gmra.mxu1 %vm385_vm0, %v2154_v11 }
  0xe4   : > { %v2092_v16 = vpop.f32.mrf.mxu0 }
  0xe5   : > { %v2110_v17 = vpop.f32.mrf.mxu1  ;;  %v456_v18 = vadd.f32 %v2092_v16, %v2545_v14 }
  0xe6   : > { %v1165_v19 = vadd.f32 %v2110_v17, %v2550_v15  ;;  %v447_v20 = vpop.f32.mrf.mxu0 }
  0xe7   : > { %v1156_v21 = vpop.f32.mrf.mxu1  ;;  %v448_v22 = vadd.f32 %v2545_v14, %v447_v20  ;;  %v512_v26 = vsel %vm329_vm1, %v456_v18, 0.0  ;;  %v2573_v37 = vsel %vm329_vm1, 0.0, %v456_v18 }
  0xe8   : > { %v2093_v23 = vpop.f32.mrf.mxu0  ;;  %v1221_v25 = vsel %vm329_vm1, %v1165_v19, 0.0  ;;  %v532_v29 = vsel %vm385_vm0, %v512_v26, 0.0  ;;  %v1157_v30 = vadd.f32 %v2550_v15, %v1156_v21  ;;  %v721_v43 = vmul.f32 %v2573_v37, %v2573_v37 }
  0xe9   : > { %v2111_v24 = vpop.f32.mrf.mxu1  ;;  %v459_v27 = vadd.f32 %v2093_v23, %v2545_v14  ;;  %v1241_v28 = vsel %vm385_vm0, %v1221_v25, 0.0  ;;  %533 = vadd.xlane.f32.xlu1 %v532_v29  ;;  %v510_v32 = vsel %vm329_vm1, %v448_v22, 0.0  ;;  %v2586_v44 = vsel %vm329_vm1, 0.0, %v1165_v19 }
  0xea   : > { %v1168_v31 = vadd.f32 %v2111_v24, %v2550_v15  ;;  %1242 = vadd.xlane.f32.xlu0 %v1241_v28  ;;  %v526_v36 = vsel %vm385_vm0, %v510_v32, 0.0  ;;  %v1219_v40 = vsel %vm329_vm1, %v1157_v30, 0.0  ;;  %v450_v47 = vpop.f32.mrf.mxu0  ;;  %v741_v49 = vsel %vm385_vm0, %v721_v43, 0.0 }
  0xeb   : > { %v1159_v33 = vpop.f32.mrf.mxu1  ;;  %v513_v34 = vsel %vm329_vm1, %v459_v27, 0.0  ;;  %v1235_v42 = vsel %vm385_vm0, %v1219_v40, 0.0  ;;  %v2590_v45 = vsel %vm329_vm1, 0.0, %v459_v27  ;;  %v1430_v51 = vmul.f32 %v2586_v44, %v2586_v44 }
  0xec   : > { %v535_v35 = vsel %vm385_vm0, %v513_v34, 0.0  ;;  %v1160_v38 = vadd.f32 %v2550_v15, %v1159_v33  ;;  %v1222_v39 = vsel %vm329_vm1, %v1168_v31, 0.0  ;;  %v722_v50 = vmul.f32 %v2590_v45, %v2590_v45  ;;  %v2096_v57 = vpop.f32.mrf.mxu0 }
  0xed   : > { %536 = vadd.xlane.f32.xlu1 %v535_v35  ;;  %v1244_v41 = vsel %vm385_vm0, %v1222_v39, 0.0  ;;  %v2602_v52 = vsel %vm329_vm1, 0.0, %v448_v22  ;;  %v2606_v53 = vsel %vm329_vm1, 0.0, %v1168_v31  ;;  %v451_v54 = vadd.f32 %v2545_v14, %v450_v47  ;;  %v2114_v1 = vpop.f32.mrf.mxu1 }
  0xee   : > { %527 = vadd.xlane.f32.xlu0 %v526_v36  ;;  %v1220_v46 = vsel %vm329_vm1, %v1160_v38, 0.0  ;;  %v744_v55 = vsel %vm385_vm0, %v722_v50, 0.0  ;;  %v1450_v56 = vsel %vm385_vm0, %v1430_v51, 0.0  ;;  %v1431_v58 = vmul.f32 %v2606_v53, %v2606_v53  ;;  %v463_v62 = vpop.f32.mrf.mxu0 }
  0xef   : > { %v1238_v48 = vsel %vm385_vm0, %v1220_v46, 0.0  ;;  %v719_v59 = vmul.f32 %v2602_v52, %v2602_v52  ;;  %v2617_v60 = vsel %vm329_vm1, 0.0, %v1157_v30  ;;  %v2621_v61 = vsel %vm329_vm1, 0.0, %v451_v54  ;;  %v1172_v6 = vpop.f32.mrf.mxu1 }
  0xf0   : > { %v1453_v63 = vsel %vm385_vm0, %v1431_v58, 0.0  ;;  %v720_v2 = vmul.f32 %v2621_v61, %v2621_v61  ;;  %v1428_v3 = vmul.f32 %v2617_v60, %v2617_v60  ;;  %v2631_v4 = vsel %vm329_vm1, 0.0, %v1160_v38  ;;  %v2097_v5 = vpop.f32.mrf.mxu0 }
  0xf1   : > { %1245 = vadd.xlane.f32.xlu1 %v1244_v41  ;;  %v735_v0 = vsel %vm385_vm0, %v719_v59, 0.0  ;;  %v1429_v9 = vmul.f32 %v2631_v4, %v2631_v4  ;;  %v472_v10 = vadd.f32 %v2096_v57, %v2545_v14  ;;  %v475_v11 = vadd.f32 %v2097_v5, %v2545_v14  ;;  %v2115_v16 = vpop.f32.mrf.mxu1 }
  0xf2   : > { %1236 = vadd.xlane.f32.xlu0 %v1235_v42  ;;  %v738_v7 = vsel %vm385_vm0, %v720_v2, 0.0  ;;  %v1444_v8 = vsel %vm385_vm0, %v1428_v3, 0.0  ;;  %v511_v12 = vsel %vm329_vm1, %v451_v54, 0.0  ;;  %v1181_v19 = vadd.f32 %v2114_v1, %v2550_v15  ;;  %v466_v23 = vpop.f32.mrf.mxu0 }
  0xf3   : > { %v1447_v17 = vsel %vm385_vm0, %v1429_v9, 0.0  ;;  %v529_v18 = vsel %vm385_vm0, %v511_v12, 0.0  ;;  %v1184_v20 = vadd.f32 %v2115_v16, %v2550_v15  ;;  %v517_v21 = vsel %vm329_vm1, %v475_v11, 0.0  ;;  %v1175_v30 = vpop.f32.mrf.mxu1 }
  0xf4   : > { %v516_v22 = vsel %vm329_vm1, %v472_v10, 0.0  ;;  %v547_v24 = vsel %vm385_vm0, %v517_v21, 0.0  ;;  %v464_v26 = vadd.f32 %v2545_v14, %v463_v62  ;;  %v467_v27 = vadd.f32 %v2545_v14, %v466_v23 }
  0xf5   : > { %1239 = vadd.xlane.f32.xlu1 %v1238_v48  ;;  %v544_v25 = vsel %vm385_vm0, %v516_v22, 0.0  ;;  %v1226_v28 = vsel %vm329_vm1, %v1184_v20, 0.0  ;;  %v1225_v29 = vsel %vm329_vm1, %v1181_v19, 0.0  ;;  %v1173_v33 = vadd.f32 %v2550_v15, %v1172_v6  ;;  %v2118_v2 = vpop.f32.mrf.mxu1 }
  0xf6   : > { %742 = vadd.xlane.f32.xlu0 %v741_v49  ;;  %v1256_v31 = vsel %vm385_vm0, %v1226_v28, 0.0  ;;  %v1253_v32 = vsel %vm385_vm0, %v1225_v29, 0.0  ;;  %v1176_v34 = vadd.f32 %v2550_v15, %v1175_v30  ;;  %v515_v35 = vsel %vm329_vm1, %v467_v27, 0.0 }
  0xf7   : > { %v514_v36 = vsel %vm329_vm1, %v464_v26, 0.0  ;;  %v541_v38 = vsel %vm385_vm0, %v515_v35, 0.0  ;;  %v2669_v40 = vsel %vm329_vm1, 0.0, %v472_v10  ;;  %v2673_v41 = vsel %vm329_vm1, 0.0, %v475_v11  ;;  %v1188_v9 = vpop.f32.mrf.mxu1 }
  0xf8   : > { %v538_v39 = vsel %vm385_vm0, %v514_v36, 0.0  ;;  %v1224_v42 = vsel %vm329_vm1, %v1176_v34, 0.0  ;;  %v1223_v43 = vsel %vm329_vm1, %v1173_v33, 0.0  ;;  %v726_v48 = vmul.f32 %v2673_v41, %v2673_v41 }
  0xf9   : > { %745 = vadd.xlane.f32.xlu1 %v744_v55  ;;  %v1250_v46 = vsel %vm385_vm0, %v1224_v42, 0.0  ;;  %v1247_v47 = vsel %vm385_vm0, %v1223_v43, 0.0  ;;  %v725_v49 = vmul.f32 %v2669_v40, %v2669_v40  ;;  %v2687_v50 = vsel %vm329_vm1, 0.0, %v1181_v19  ;;  %v2119_v19 = vpop.f32.mrf.mxu1 }
  0xfa   : > { %1451 = vadd.xlane.f32.xlu0 %v1450_v56  ;;  %v2691_v51 = vsel %vm329_vm1, 0.0, %v1184_v20  ;;  %v756_v54 = vsel %vm385_vm0, %v726_v48, 0.0  ;;  %v2100_v56 = vpop.f32.mrf.mxu0  ;;  %v1434_v58 = vmul.f32 %v2687_v50, %v2687_v50  ;;  %v2701_v59 = vsel %vm329_vm1, 0.0, %v464_v26 }
  0xfb   : > { %v753_v55 = vsel %vm385_vm0, %v725_v49, 0.0  ;;  %v1435_v57 = vmul.f32 %v2691_v51, %v2691_v51  ;;  %v2705_v62 = vsel %vm329_vm1, 0.0, %v467_v27  ;;  %v723_v5 = vmul.f32 %v2701_v59, %v2701_v59 }
  0xfc   : > { %v1462_v1 = vsel %vm385_vm0, %v1434_v58, 0.0  ;;  %v724_v3 = vmul.f32 %v2705_v62, %v2705_v62  ;;  %v2715_v6 = vsel %vm329_vm1, 0.0, %v1173_v33  ;;  %v2732_v22 = vadd.f32 %v2118_v2, %v2550_v15  ;;  %v1191_v33 = vpop.f32.mrf.mxu1 }
  0xfd   : > { %1454 = vadd.xlane.f32.xlu1 %v1453_v63  ;;  %v479_v63 = vpop.f32.mrf.mxu0  ;;  %v747_v11 = vsel %vm385_vm0, %v723_v5, 0.0  ;;  %v1432_v16 = vmul.f32 %v2715_v6, %v2715_v6  ;;  %v2735_v23 = vadd.f32 %v2119_v19, %v2550_v15  ;;  %v2754_v36 = vadd.f32 %v2550_v15, %v1188_v9 }
  0xfe   : > { %736 = vadd.xlane.f32.xlu0 %v735_v0  ;;  %v1465_v0 = vsel %vm385_vm0, %v1435_v57, 0.0  ;;  %v750_v10 = vsel %vm385_vm0, %v724_v3, 0.0  ;;  %v480_v29 = vadd.f32 %v2545_v14, %v479_v63  ;;  %v2122_v63 = vpop.f32.mrf.mxu1 }
  0xff   : > { %v1456_v21 = vsel %vm385_vm0, %v1432_v16, 0.0 }
 0x100   : > { %v518_v42 = vsel %vm329_vm1, %v480_v29, 0.0  ;;  %v2787_v2 = vsel %vm329_vm1, 0.0, %v480_v29 }
 0x101   : > { %739 = vadd.xlane.f32.xlu1 %v738_v7  ;;  %v2719_v7 = vsel %vm329_vm1, 0.0, %v1176_v34 }
 0x102   : > { %1445 = vadd.xlane.f32.xlu0 %v1444_v8  ;;  %v2101_v8 = vpop.f32.mrf.mxu0  ;;  %v1433_v12 = vmul.f32 %v2719_v7, %v2719_v7 }
 0x104   : > { %v1459_v20 = vsel %vm385_vm0, %v1433_v12, 0.0  ;;  %v482_v26 = vpop.f32.mrf.mxu0  ;;  %v727_v12 = vmul.f32 %v2787_v2, %v2787_v2 }
 0x105   : > { %1448 = vadd.xlane.f32.xlu1 %v1447_v17  ;;  %v488_v17 = vadd.f32 %v2100_v56, %v2545_v14  ;;  %v483_v30 = vadd.f32 %v2545_v14, %v482_v26 }
 0x106   : > { %530 = vadd.xlane.f32.xlu0 %v529_v18  ;;  %v491_v18 = vadd.f32 %v2101_v8, %v2545_v14  ;;  %v1204_v8 = vpop.f32.mrf.mxu1 }
 0x107   : > { %v2767_v48 = vsel %vm329_vm1, 0.0, %v488_v17  ;;  %v2791_v3 = vsel %vm329_vm1, 0.0, %v483_v30 }
 0x108   : > { %v2771_v49 = vsel %vm329_vm1, 0.0, %v491_v18 }
 0x109   : > { %548 = vadd.xlane.f32.xlu1 %v547_v24  ;;  %v521_v24 = vsel %vm329_vm1, %v491_v18, 0.0  ;;  %v2123_v18 = vpop.f32.mrf.mxu1 }
 0x10a   : > { %545 = vadd.xlane.f32.xlu0 %v544_v25  ;;  %v520_v25 = vsel %vm329_vm1, %v488_v17, 0.0  ;;  %v559_v27 = vsel %vm385_vm0, %v521_v24, 0.0  ;;  %v2807_v24 = vadd.f32 %v2123_v18, %v2550_v15 }
 0x10b   : > { %v556_v28 = vsel %vm385_vm0, %v520_v25, 0.0 }
 0x10d   : > { %1257 = vadd.xlane.f32.xlu1 %v1256_v31  ;;  %v1230_v31 = vsel %vm329_vm1, %v2735_v23, 0.0 }
 0x10e   : > { %1254 = vadd.xlane.f32.xlu0 %v1253_v32  ;;  %v1229_v32 = vsel %vm329_vm1, %v2732_v22, 0.0  ;;  %v1268_v34 = vsel %vm385_vm0, %v1230_v31, 0.0 }
 0x10f   : > { %v1265_v35 = vsel %vm385_vm0, %v1229_v32, 0.0  ;;  %v1234_v32 = vsel %vm329_vm1, %v2807_v24, 0.0 }
 0x111   : > { %542 = vadd.xlane.f32.xlu1 %v541_v38  ;;  %v2757_v38 = vadd.f32 %v2550_v15, %v1191_v33 }
 0x112   : > { %539 = vadd.xlane.f32.xlu0 %v538_v39  ;;  %v519_v39 = vsel %vm329_vm1, %v483_v30, 0.0 }
 0x113   : > { %v553_v43 = vsel %vm385_vm0, %v519_v39, 0.0 }
 0x115   : > { %1251 = vadd.xlane.f32.xlu1 %v1250_v46  ;;  %v550_v46 = vsel %vm385_vm0, %v518_v42, 0.0  ;;  %v1205_v42 = vadd.f32 %v2550_v15, %v1204_v8 }
 0x116   : > { %1248 = vadd.xlane.f32.xlu0 %v1247_v47  ;;  %v2104_v47 = vpop.f32.mrf.mxu0 }
 0x117   : > { %v504_v16 = vadd.f32 %v2104_v47, %v2545_v14 }
 0x118   : > { %v495_v56 = vpop.f32.mrf.mxu0 }
 0x119   : > { %757 = vadd.xlane.f32.xlu1 %v756_v54  ;;  %v1228_v54 = vsel %vm329_vm1, %v2757_v38, 0.0  ;;  %v524_v26 = vsel %vm329_vm1, %v504_v16, 0.0  ;;  %v496_v30 = vadd.f32 %v2545_v14, %v495_v56 }
 0x11a   : > { %754 = vadd.xlane.f32.xlu0 %v753_v55  ;;  %v1227_v55 = vsel %vm329_vm1, %v2754_v36, 0.0  ;;  %v1262_v57 = vsel %vm385_vm0, %v1228_v54, 0.0  ;;  %v2105_v5 = vpop.f32.mrf.mxu0  ;;  %v568_v29 = vsel %vm385_vm0, %v524_v26, 0.0 }
 0x11b   : > { %v1259_v58 = vsel %vm385_vm0, %v1227_v55, 0.0  ;;  %v507_v17 = vadd.f32 %v2105_v5, %v2545_v14  ;;  %v2836_v55 = vsel %vm329_vm1, 0.0, %v2754_v36 }
 0x11d   : > { %1466 = vadd.xlane.f32.xlu1 %v1465_v0  ;;  %v730_v0 = vmul.f32 %v2771_v49, %v2771_v49  ;;  %v525_v25 = vsel %vm329_vm1, %v507_v17, 0.0 }
 0x11e   : > { %1463 = vadd.xlane.f32.xlu0 %v1462_v1  ;;  %v729_v1 = vmul.f32 %v2767_v48, %v2767_v48 }
 0x11f   : > { %v768_v9 = vsel %vm385_vm0, %v730_v0, 0.0  ;;  %v1436_v0 = vmul.f32 %v2836_v55, %v2836_v55 }
 0x121   : > { %751 = vadd.xlane.f32.xlu1 %v750_v10  ;;  %v765_v10 = vsel %vm385_vm0, %v729_v1, 0.0  ;;  %v2860_v1 = vsel %vm329_vm1, 0.0, %v504_v16  ;;  %v1468_v8 = vsel %vm385_vm0, %v1436_v0, 0.0 }
 0x122   : > { %748 = vadd.xlane.f32.xlu0 %v747_v11  ;;  %v728_v11 = vmul.f32 %v2791_v3, %v2791_v3  ;;  %3793 = vst [vmem:[#allocation6_spill] sm:$0xff] %v2860_v1 }
 0x124   : > { %v762_v19 = vsel %vm385_vm0, %v728_v11, 0.0  ;;  %v2874_v11 = vsel %vm329_vm1, 0.0, %v507_v17 }
 0x125   : > { %1460 = vadd.xlane.f32.xlu1 %v1459_v20  ;;  %v759_v20 = vsel %vm385_vm0, %v727_v12, 0.0  ;;  %3795 = vst [vmem:[#allocation8_spill] sm:$0xff] %v2874_v11  ;;  %v734_v18 = vmul.f32 %v2874_v11, %v2874_v11 }
 0x126   : > { %1457 = vadd.xlane.f32.xlu0 %v1456_v21  ;;  %v2804_v21 = vadd.f32 %v2122_v63, %v2550_v15 }
 0x128   : > { %v1233_v33 = vsel %vm329_vm1, %v2804_v21, 0.0 }
 0x129   : > { %560 = vadd.xlane.f32.xlu1 %v559_v27  ;;  %v498_v27 = vpop.f32.mrf.mxu0  ;;  %v1277_v39 = vsel %vm385_vm0, %v1233_v33, 0.0 }
 0x12a   : > { %557 = vadd.xlane.f32.xlu0 %v556_v28  ;;  %v571_v28 = vsel %vm385_vm0, %v525_v25, 0.0  ;;  %v499_v31 = vadd.f32 %v2545_v14, %v498_v27  ;;  %v780_v25 = vsel %vm385_vm0, %v734_v18, 0.0 }
 0x12c   : > { %v523_v14 = vsel %vm329_vm1, %v499_v31, 0.0  ;;  %v2889_v17 = vsel %vm329_vm1, 0.0, %v499_v31 }
 0x12d   : > { %1269 = vadd.xlane.f32.xlu1 %v1268_v34  ;;  %v1207_v34 = vpop.f32.mrf.mxu1  ;;  %v565_v47 = vsel %vm385_vm0, %v523_v14, 0.0  ;;  %3797 = vst [vmem:[#allocation10_spill] sm:$0xff] %v2889_v17  ;;  %v732_v27 = vmul.f32 %v2889_v17, %v2889_v17 }
 0x12e   : > { %1266 = vadd.xlane.f32.xlu0 %v1265_v35  ;;  %v1280_v35 = vsel %vm385_vm0, %v1234_v32, 0.0 }
 0x131   : > { %554 = vadd.xlane.f32.xlu1 %v553_v43  ;;  %v1208_v43 = vadd.f32 %v2550_v15, %v1207_v34  ;;  %v2841_v15 = vsel %vm329_vm1, 0.0, %v2757_v38  ;;  %v2856_v38 = vsel %vm329_vm1, 0.0, %v2735_v23  ;;  %v2870_v23 = vsel %vm329_vm1, 0.0, %v496_v30 }
 0x132   : > { %551 = vadd.xlane.f32.xlu0 %v550_v46  ;;  %v522_v46 = vsel %vm329_vm1, %v496_v30, 0.0  ;;  %v1437_v36 = vmul.f32 %v2841_v15, %v2841_v15  ;;  %3792 = vst [vmem:[#allocation5_spill] sm:$0xff] %v2856_v38  ;;  %3794 = vst [vmem:[#allocation7_spill] sm:$0xff] %v2870_v23  ;;  %v774_v30 = vsel %vm385_vm0, %v732_v27, 0.0  ;;  %v2914_v34 = vsel %vm329_vm1, 0.0, %v2804_v21 }
 0x133   : > { %v562_v54 = vsel %vm385_vm0, %v522_v46, 0.0  ;;  %v1232_v56 = vsel %vm329_vm1, %v1208_v43, 0.0  ;;  %3800 = vst [vmem:[#allocation13_spill] sm:$0xff] %v2914_v34  ;;  %v1442_v14 = vmul.f32 %v2914_v34, %v2914_v34 }
 0x134   : > { %v1471_v5 = vsel %vm385_vm0, %v1437_v36, 0.0 }
 0x135   : > { %1263 = vadd.xlane.f32.xlu1 %v1262_v57  ;;  %v1231_v57 = vsel %vm329_vm1, %v1205_v42, 0.0  ;;  %v1486_v46 = vsel %vm385_vm0, %v1442_v14, 0.0 }
 0x136   : > { %1260 = vadd.xlane.f32.xlu0 %v1259_v58  ;;  %v1274_v58 = vsel %vm385_vm0, %v1232_v56, 0.0  ;;  %v1271_v63 = vsel %vm385_vm0, %v1231_v57, 0.0 }
 0x139   : > { %769 = vadd.xlane.f32.xlu1 %v768_v9  ;;  %v1439_v9 = vmul.f32 %v2856_v38, %v2856_v38 }
 0x13a   : > { %766 = vadd.xlane.f32.xlu0 %v765_v10  ;;  %v733_v10 = vmul.f32 %v2860_v1, %v2860_v1 }
 0x13b   : > { %v1477_v12 = vsel %vm385_vm0, %v1439_v9, 0.0 }
 0x13c   : > { %v777_v16 = vsel %vm385_vm0, %v733_v10, 0.0 }
 0x13d   : > { %763 = vadd.xlane.f32.xlu1 %v762_v19  ;;  %v731_v19 = vmul.f32 %v2870_v23, %v2870_v23 }
 0x13e   : > { %760 = vadd.xlane.f32.xlu0 %v759_v20  ;;  %v2885_v20 = vsel %vm329_vm1, 0.0, %v2732_v22  ;;  %v2899_v22 = vsel %vm329_vm1, 0.0, %v1205_v42 }
 0x13f   : > { %3796 = vst [vmem:[#allocation9_spill] sm:$0xff] %v2885_v20  ;;  %v771_v26 = vsel %vm385_vm0, %v731_v19, 0.0  ;;  %3798 = vst [vmem:[#allocation11_spill] sm:$0xff] %v2899_v22  ;;  %v1440_v33 = vmul.f32 %v2899_v22, %v2899_v22 }
 0x141   : > { %572 = vadd.xlane.f32.xlu1 %v571_v28  ;;  %v1438_v28 = vmul.f32 %v2885_v20, %v2885_v20  ;;  %v1480_v42 = vsel %vm385_vm0, %v1440_v33, 0.0 }
 0x142   : > { %569 = vadd.xlane.f32.xlu0 %v568_v29  ;;  %v2903_v29 = vsel %vm329_vm1, 0.0, %v1208_v43 }
 0x143   : > { %3799 = vst [vmem:[#allocation12_spill] sm:$0xff] %v2903_v29  ;;  %v1474_v31 = vsel %vm385_vm0, %v1438_v28, 0.0  ;;  %v1441_v32 = vmul.f32 %v2903_v29, %v2903_v29 }
 0x145   : > { %1281 = vadd.xlane.f32.xlu1 %v1280_v35  ;;  %v2919_v35 = vsel %vm329_vm1, 0.0, %v2807_v24 }
 0x146   : > { %1278 = vadd.xlane.f32.xlu0 %v1277_v39  ;;  %3801 = vst [vmem:[#allocation14_spill] sm:$0xff] %v2919_v35  ;;  %v1483_v39 = vsel %vm385_vm0, %v1441_v32, 0.0  ;;  %v1443_v43 = vmul.f32 %v2919_v35, %v2919_v35 }
 0x148   : > { %v1489_v21 = vsel %vm385_vm0, %v1443_v43, 0.0 }
 0x149   : > { %566 = vadd.xlane.f32.xlu1 %v565_v47 }
 0x14a   : > { %563 = vadd.xlane.f32.xlu0 %v562_v54 }
 0x14d   : > { %1275 = vadd.xlane.f32.xlu1 %v1274_v58 }
 0x14e   : > { %1272 = vadd.xlane.f32.xlu0 %v1271_v63 }
 0x151   : > { %1472 = vadd.xlane.f32.xlu1 %v1471_v5 }
 0x152   : > { %1469 = vadd.xlane.f32.xlu0 %v1468_v8 }
 0x155   : > { %1478 = vadd.xlane.f32.xlu1 %v1477_v12 }
 0x156   : > { %778 = vadd.xlane.f32.xlu0 %v777_v16 }
 0x159   : > { %781 = vadd.xlane.f32.xlu1 %v780_v25 }
 0x15a   : > { %772 = vadd.xlane.f32.xlu0 %v771_v26 }
 0x15d   : > { %775 = vadd.xlane.f32.xlu1 %v774_v30 }
 0x15e   : > { %1475 = vadd.xlane.f32.xlu0 %v1474_v31 }
 0x161   : > { %1484 = vadd.xlane.f32.xlu1 %v1483_v39 }
 0x162   : > { %1481 = vadd.xlane.f32.xlu0 %v1480_v42 }
 0x165   : > { %1490 = vadd.xlane.f32.xlu1 %v1489_v21 }
 0x166   : > { %1487 = vadd.xlane.f32.xlu0 %v1486_v46 }
 0x172   : > { %v534_v47 = vpop.xlane.xlu1 %533 }
 0x173   : > { %v1243_v24 = vpop.xlane.xlu0 %1242  ;;  %v1931_v56 = vmul.f32 -1.442695, %v534_v47 }
 0x174   : > { %v1990_v54 = vmul.f32 -1.442695, %v1243_v24 }
 0x176   : > { %2155 = vpow2.f32 %v1990_v54  ;;  %v537_v57 = vpop.xlane.xlu1 %536 }
 0x177   : > { %2157 = vpow2.f32 %v1931_v56  ;;  %v528_v58 = vpop.xlane.xlu0 %527  ;;  %v1932_v63 = vmul.f32 -1.442695, %v537_v57 }
 0x178   : > { %v1929_v36 = vmul.f32 -1.442695, %v528_v58 }
 0x179   : > { %2159 = vpow2.f32 %v1932_v63 }
 0x17a   : > { %2161 = vpow2.f32 %v1929_v36  ;;  %v1246_v0 = vpop.xlane.xlu1 %1245 }
 0x17b   : > { %v1237_v5 = vpop.xlane.xlu0 %1236  ;;  %v1991_v8 = vmul.f32 -1.442695, %v1246_v0 }
 0x17c   : > { %v1988_v9 = vmul.f32 -1.442695, %v1237_v5 }
 0x17d   : > { %2163 = vpow2.f32 %v1991_v8 }
 0x17e   : > { %2165 = vpow2.f32 %v1988_v9  ;;  %v1240_v10 = vpop.xlane.xlu1 %1239  ;;  %v2931_v9 = vstv %s1977_s23 }
 0x17f   : > { %v743_v12 = vpop.xlane.xlu0 %742  ;;  %v1989_v16 = vmul.f32 -1.442695, %v1240_v10 }
 0x180   : > { %v785_v42 = vmax.f32 %v743_v12, 1e-08  ;;  %v2933_v12 = vstv %s330_s25 }
 0x181   : > { %2167 = vpow2.f32 %v1989_v16 }
 0x182   : > { %v746_v19 = vpop.xlane.xlu1 %745 }
 0x183   : > { %v2156_v18 = vpop.eup %2155  ;;  %v1452_v25 = vpop.xlane.xlu0 %1451  ;;  %v786_v57 = vmax.f32 %v746_v19, 1e-08 }
 0x184   : > { %v2158_v26 = vpop.eup %2157  ;;  %v1349_v27 = vadd.f32 1.0, %v2156_v18  ;;  %v1494_v14 = vmax.f32 %v1452_v25, 1e-08 }
 0x185   : > { %v640_v28 = vadd.f32 1.0, %v2158_v26 }
 0x186   : > { %2169 = vrcp.f32 %v1349_v27  ;;  %v2160_v30 = vpop.eup %2159  ;;  %v1455_v31 = vpop.xlane.xlu1 %1454 }
 0x187   : > { %2171 = vrcp.f32 %v640_v28  ;;  %v737_v32 = vpop.xlane.xlu0 %736  ;;  %v2162_v33 = vpop.eup %2161  ;;  %v641_v39 = vadd.f32 1.0, %v2160_v30  ;;  %v1495_v63 = vmax.f32 %v1455_v31, 1e-08 }
 0x188   : > { %v638_v43 = vadd.f32 1.0, %v2162_v33  ;;  %v783_v10 = vmax.f32 %v737_v32, 1e-08 }
 0x189   : > { %2173 = vrcp.f32 %v641_v39 }
 0x18a   : > { %v2164_v21 = vpop.eup %2163  ;;  %2175 = vrcp.f32 %v638_v43  ;;  %v2929_v46 = vpop.xlane.xlu1 %739 }
 0x18b   : > { %v1446_v24 = vpop.xlane.xlu0 %1445  ;;  %v2166_v47 = vpop.eup %2165  ;;  %v1350_v54 = vadd.f32 1.0, %v2164_v21  ;;  %2177 = vrcp.f32 %v785_v42 }
 0x18c   : > { %v1347_v56 = vadd.f32 1.0, %v2166_v47  ;;  %2179 = vrcp.f32 %v1494_v14  ;;  %v1492_v31 = vmax.f32 %v1446_v24, 1e-08 }
 0x18d   : > { %2181 = vrcp.f32 %v1350_v54 }
 0x18e   : > { %v2168_v58 = vpop.eup %2167  ;;  %2183 = vrcp.f32 %v1347_v56  ;;  %v1449_v36 = vpop.xlane.xlu1 %1448 }
 0x18f   : > { %v531_v0 = vpop.xlane.xlu0 %530  ;;  %v1348_v5 = vadd.f32 1.0, %v2168_v58  ;;  %2185 = vrcp.f32 %v786_v57  ;;  %v1493_v54 = vmax.f32 %v1449_v36, 1e-08  ;;  %v784_v36 = vmax.f32 %v2929_v46, 1e-08 }
 0x190   : > { %v1930_v8 = vmul.f32 -1.442695, %v531_v0 }
 0x191   : > { %2187 = vrcp.f32 %v1348_v5 }
 0x192   : > { %2189 = vrcp.f32 %v1495_v63  ;;  %v549_v18 = vpop.xlane.xlu1 %548 }
 0x193   : > { %v2170_v16 = vpop.eup %2169  ;;  %v546_v19 = vpop.xlane.xlu0 %545  ;;  %2191 = vpow2.f32 %v1930_v8  ;;  %v1936_v27 = vmul.f32 -1.442695, %v549_v18 }
 0x194   : > { %v2172_v25 = vpop.eup %2171  ;;  %v1398_v26 = vmul.f32 %v2170_v16, %v2931_v9  ;;  %v1935_v28 = vmul.f32 -1.442695, %v546_v19  ;;  %2193 = vrcp.f32 %v783_v10 }
 0x195   : > { %v689_v30 = vmul.f32 %v2172_v25, %v2933_v12  ;;  %2195 = vpow2.f32 %v1936_v27 }
 0x196   : > { %v2937_v33 = vadd.f32 1.1, %v1398_v26  ;;  %v2174_v32 = vpop.eup %2173  ;;  %2197 = vpow2.f32 %v1935_v28  ;;  %v1258_v42 = vpop.xlane.xlu1 %1257 }
 0x197   : > { %v2939_v39 = vadd.f32 1.1, %v689_v30  ;;  %v1255_v43 = vpop.xlane.xlu0 %1254  ;;  %v2176_v14 = vpop.eup %2175  ;;  %v690_v21 = vmul.f32 %v2174_v32, %v2933_v12  ;;  %v1995_v56 = vmul.f32 -1.442695, %v1258_v42  ;;  %2199 = vrcp.f32 %v1492_v31 }
 0x198   : > { %v1510_v47 = vmul.f32 %v2937_v33, %v2937_v33  ;;  %v2178_v57 = vpop.eup %2177  ;;  %v687_v24 = vmul.f32 %v2176_v14, %v2933_v12  ;;  %v1994_v63 = vmul.f32 -1.442695, %v1255_v43 }
 0x199   : > { %v801_v58 = vmul.f32 %v2939_v39, %v2939_v39  ;;  %v2180_v0 = vpop.eup %2179  ;;  %v2947_v5 = vadd.f32 1.1, %v690_v21  ;;  %2201 = vpow2.f32 %v1995_v56 }
 0x19a   : > { %v2006_v8 = vadd.f32 -1.0, %v1510_v47  ;;  %v2182_v10 = vpop.eup %2181  ;;  %v2949_v18 = vadd.f32 1.1, %v687_v24  ;;  %v543_v19 = vpop.xlane.xlu1 %542  ;;  %2203 = vrcp.f32 %v1493_v54 }
 0x19b   : > { %v1947_v16 = vadd.f32 -1.0, %v801_v58  ;;  %v540_v25 = vpop.xlane.xlu0 %539  ;;  %v2184_v26 = vpop.eup %2183  ;;  %v1399_v27 = vmul.f32 %v2182_v10, %v2931_v9  ;;  %v802_v28 = vmul.f32 %v2947_v5, %v2947_v5  ;;  %2205 = vpow2.f32 %v1994_v63 }
 0x19c   : > { %v2955_v30 = vmul.f32 %v2180_v0, %v2006_v8  ;;  %v1396_v31 = vmul.f32 %v2184_v26, %v2931_v9  ;;  %v799_v42 = vmul.f32 %v2949_v18, %v2949_v18  ;;  %v2186_v46 = vpop.eup %2185  ;;  %v1934_v8 = vmul.f32 -1.442695, %v543_v19 }
 0x19d   : > { %v2958_v32 = vmul.f32 %v2178_v57, %v1947_v16  ;;  %v1948_v43 = vadd.f32 -1.0, %v802_v28  ;;  %v2969_v57 = vadd.f32 1.1, %v1399_v27 }
 0x19e   : > { %2207 = vrsqrt.f32 %v2955_v30  ;;  %v2188_v14 = vpop.eup %2187  ;;  %v1252_v21 = vpop.xlane.xlu1 %1251  ;;  %v1945_v0 = vadd.f32 -1.0, %v799_v42  ;;  %v2971_v63 = vadd.f32 1.1, %v1396_v31  ;;  %vm1588_vm2 = vcmp.eq.f32.partialorder %v2955_v30, inf }
 0x19f   : > { %2209 = vrsqrt.f32 %v2958_v32  ;;  %v2964_v47 = vpop.xlane.xlu0 %1248  ;;  %v2190_v56 = vpop.eup %2189  ;;  %v1397_v54 = vmul.f32 %v2188_v14, %v2931_v9  ;;  %v2967_v24 = vmul.f32 %v2186_v46, %v1948_v43  ;;  %v1511_v26 = vmul.f32 %v2969_v57, %v2969_v57 }
 0x1a0   : > { %v2192_v58 = vpop.eup %2191  ;;  %2211 = vrcp.f32 %v784_v36  ;;  %v1508_v46 = vmul.f32 %v2971_v63, %v2971_v63  ;;  %v1933_v14 = vmul.f32 -1.442695, %v540_v25  ;;  %vm879_vm3 = vcmp.eq.f32.partialorder %v2958_v32, inf }
 0x1a1   : > { %v2194_v10 = vpop.eup %2193  ;;  %2213 = vrsqrt.f32 %v2967_v24  ;;  %v2980_v27 = vadd.f32 1.1, %v1397_v54  ;;  %v639_v19 = vadd.f32 1.0, %v2192_v58  ;;  %vm881_vm4 = vcmp.eq.f32.partialorder %v2958_v32, 0.0 }
 0x1a2   : > { %v2196_v16 = vpop.eup %2195  ;;  %v2976_v28 = vmul.f32 %v2194_v10, %v1945_v0  ;;  %v2982_v43 = vpop.xlane.xlu1 %757  ;;  %2215 = vpow2.f32 %v1934_v8  ;;  %v2007_v0 = vadd.f32 -1.0, %v1511_v26  ;;  %v2004_v22 = vadd.f32 -1.0, %v1508_v46 }
 0x1a3   : > { %v2984_v36 = vpop.xlane.xlu0 %754  ;;  %v2198_v31 = vpop.eup %2197  ;;  %v645_v42 = vadd.f32 1.0, %v2196_v16  ;;  %v1509_v29 = vmul.f32 %v2980_v27, %v2980_v27  ;;  %vm1590_vm5 = vcmp.eq.f32.partialorder %v2955_v30, 0.0  ;;  %vm886_vm7 = vcmp.eq.f32.partialorder %v2967_v24, inf }
 0x1a4   : > { %2217 = vrsqrt.f32 %v2976_v28  ;;  %v2200_v10 = vpop.eup %2199  ;;  %v2993_v58 = vmul.f32 %v2190_v56, %v2007_v0  ;;  %v644_v25 = vadd.f32 1.0, %v2198_v31  ;;  %v882_v31 = vand.u32 2147483648, %v2958_v32 }
 0x1a5   : > { %2219 = vrcp.f32 %v639_v19  ;;  %v2999_v26 = vmul.f32 %v2200_v10, %v2004_v22  ;;  %v2005_v35 = vadd.f32 -1.0, %v1509_v29  ;;  %v1591_v22 = vand.u32 2147483648, %v2955_v30 }
 0x1a6   : > { %v2202_v20 = vpop.eup %2201  ;;  %2221 = vrcp.f32 %v645_v42  ;;  %v2995_v8 = vpop.xlane.xlu1 %1466  ;;  %vm888_vm8 = vcmp.eq.f32.partialorder %v2967_v24, 0.0  ;;  %v1993_v19 = vmul.f32 -1.442695, %v1252_v21  ;;  %v889_v10 = vand.u32 2147483648, %v2967_v24 }
 0x1a7   : > { %v2997_v16 = vpop.xlane.xlu0 %1463  ;;  %v1354_v54 = vadd.f32 1.0, %v2202_v20  ;;  %2223 = vpow2.f32 %v1933_v14  ;;  %v2204_v46 = vpop.eup %2203  ;;  %v1992_v23 = vmul.f32 -1.442695, %v2964_v47  ;;  %vm865_vm9 = vcmp.eq.f32.partialorder %v2976_v28, inf }
 0x1a8   : > { %2225 = vrsqrt.f32 %v2993_v58  ;;  %v2206_v56 = vpop.eup %2205  ;;  %v3010_v29 = vmul.f32 %v2204_v46, %v2005_v35  ;;  %vm867_vm10 = vcmp.eq.f32.partialorder %v2976_v28, 0.0  ;;  %v868_v46 = vand.u32 2147483648, %v2976_v28 }
 0x1a9   : > { %2227 = vrsqrt.f32 %v2999_v26  ;;  %v1353_v35 = vadd.f32 1.0, %v2206_v56  ;;  %vm1595_vm11 = vcmp.eq.f32.partialorder %v2993_v58, inf  ;;  %vm1597_vm12 = vcmp.eq.f32.partialorder %v2993_v58, 0.0 }
 0x1aa   : > { %2229 = vrcp.f32 %v644_v25  ;;  %v3012_v42 = vpop.xlane.xlu1 %751  ;;  %vm1574_vm13 = vcmp.eq.f32.partialorder %v2999_v26, inf  ;;  %vm1576_vm14 = vcmp.eq.f32.partialorder %v2999_v26, 0.0  ;;  %vm1581_vm15 = vcmp.eq.f32.partialorder %v3010_v29, inf }
 0x1ab   : > { %v2208_v20 = vpop.eup %2207  ;;  %v3014_v14 = vpop.xlane.xlu0 %748  ;;  %2231 = vrcp.f32 %v1354_v54  ;;  %v790_v54 = vmax.f32 %v2982_v43, 1e-08  ;;  %vm1583_vm0 = vcmp.eq.f32.partialorder %v3010_v29, 0.0 }
 0x1ac   : > { %v2210_v0 = vpop.eup %2209  ;;  %v1587_v34 = vmul.f32 %v2208_v20, %v2955_v30  ;;  %2233 = vrsqrt.f32 %v3010_v29 }
 0x1ad   : > { %v878_v17 = vmul.f32 %v2210_v0, %v2958_v32  ;;  %v3022_v21 = vpop.eup %2211  ;;  %v1598_v0 = vand.u32 2147483648, %v2993_v58  ;;  %2235 = vpow2.f32 %v1993_v19 }
 0x1ae   : > { %v1589_v25 = vsel %vm1588_vm2, %v2955_v30, %v1587_v34  ;;  %v2214_v47 = vpop.eup %2213  ;;  %v3036_v1 = vpop.xlane.xlu1 %1460  ;;  %2237 = vpow2.f32 %v1992_v23 }
 0x1af   : > { %v880_v20 = vsel %vm879_vm3, %v2958_v32, %v878_v17  ;;  %v1592_v56 = vsel %vm1590_vm5, %v1591_v22, %v1589_v25  ;;  %v3038_v34 = vpop.xlane.xlu0 %1457  ;;  %v885_v43 = vmul.f32 %v2214_v47, %v2967_v24  ;;  %v2216_v17 = vpop.eup %2215  ;;  %v1577_v22 = vand.u32 2147483648, %v2999_v26 }
 0x1b0   : > { %v883_v11 = vsel %vm881_vm4, %v882_v31, %v880_v20  ;;  %v1686_v38 = vmul.f32 %v1592_v56, %v2586_v44  ;;  %2239 = vrcp.f32 %v1353_v35  ;;  %v789_v32 = vmax.f32 %v2984_v36, 1e-08 }
 0x1b1   : > { %v977_v30 = vmul.f32 %v883_v11, %v2573_v37  ;;  %v2218_v31 = vpop.eup %2217  ;;  %v887_v44 = vsel %vm886_vm7, %v2967_v24, %v885_v43  ;;  %v643_v23 = vadd.f32 1.0, %v2216_v17  ;;  %2241 = vrcp.f32 %v790_v54 }
 0x1b2   : > { %v1702_v37 = vsel %vm329_vm1, %v2937_v33, %v1686_v38  ;;  %v2220_v11 = vpop.eup %2219  ;;  %v3802_v36 = vsub.f32 0.0, %v2939_v39  ;;  %v890_v35 = vsel %vm888_vm8, %v889_v10, %v887_v44  ;;  %v864_v33 = vmul.f32 %v2218_v31, %v2976_v28  ;;  %v3076_v25 = vpop.xlane.xlu1 %560 }
 0x1b3   : > { %v2056_v38 = vpack.c.bf16 %v1702_v37, %v1702_v37  ;;  %v3078_v54 = vpop.xlane.xlu0 %557  ;;  %v2222_v47 = vpop.eup %2221  ;;  %v978_v56 = vmul.f32 %v890_v35, %v2590_v45  ;;  %v688_v39 = vmul.f32 %v2220_v11, %v2933_v12  ;;  %2243 = vrcp.f32 %v643_v23 }
 0x1b4   : > { %v1009_v19 = vsel %vm329_vm1, %v3802_v36, %v977_v30  ;;  %v2224_v43 = vpop.eup %2223  ;;  %v866_v24 = vsel %vm865_vm9, %v2976_v28, %v864_v33  ;;  %v694_v10 = vmul.f32 %v2222_v47, %v2933_v12  ;;  %2245 = vrcp.f32 %v789_v32 }
 0x1b5   : > { %v2040_v20 = vpack.c.bf16 %v1009_v19, %v1009_v19  ;;  %1782 = vst.msk [vmem:[%s3054_s28 + $0x8] sm:$0xf] %vm1087_vm6, %v2056_v38  ;;  %v1499_v17 = vmax.f32 %v2995_v8, 1e-08  ;;  %v2226_v30 = vpop.eup %2225  ;;  %v3803_v45 = vsub.f32 0.0, %v2947_v5  ;;  %v869_v44 = vsel %vm867_vm10, %v868_v46, %v866_v24 }
 0x1b6   : > { %v3098_v37 = vadd.f32 1.1, %v688_v39  ;;  %v642_v23 = vadd.f32 1.0, %v2224_v43  ;;  %v2228_v11 = vpop.eup %2227  ;;  %v1594_v32 = vmul.f32 %v2226_v30, %v2993_v58  ;;  %v975_v8 = vmul.f32 %v869_v44, %v2602_v52 }
 0x1b7   : > { %1090 = vst.msk [vmem:[%s3067_s8 + $0x8] sm:$0xf] %vm1087_vm6, %v2040_v20  ;;  %v1010_v31 = vsel %vm329_vm1, %v3803_v45, %v978_v56  ;;  %v3102_v19 = vadd.f32 1.1, %v694_v10  ;;  %v2230_v35 = vpop.eup %2229  ;;  %v1573_v5 = vmul.f32 %v2228_v11, %v2999_v26  ;;  %v3804_v52 = vsub.f32 0.0, %v2949_v18  ;;  %v3119_v20 = vpop.xlane.xlu1 %1269 }
 0x1b8   : > { %v2041_v36 = vpack.c.bf16 %v1010_v31, %v1010_v31  ;;  %v800_v28 = vmul.f32 %v3098_v37, %v3098_v37  ;;  %2247 = vrcp.f32 %v642_v23  ;;  %v2232_v46 = vpop.eup %2231  ;;  %v1596_v38 = vsel %vm1595_vm11, %v2993_v58, %v1594_v32  ;;  %v3121_v56 = vpop.xlane.xlu0 %1266 }
 0x1b9   : > { %v1007_v33 = vsel %vm329_vm1, %v3804_v52, %v975_v8  ;;  %v806_v47 = vmul.f32 %v3102_v19, %v3102_v19  ;;  %2249 = vrcp.f32 %v1499_v17  ;;  %v2234_v39 = vpop.eup %2233  ;;  %v1599_v43 = vsel %vm1597_vm12, %v1598_v0, %v1596_v38 }
 0x1ba   : > { %1091 = vst.msk [vmem:[%s3067_s8 + $0xc] sm:$0xf] %vm1087_vm6, %v2041_v36  ;;  %v2038_v24 = vpack.c.bf16 %v1007_v33, %v1007_v33  ;;  %v1575_v18 = vsel %vm1574_vm13, %v2999_v26, %v1573_v5  ;;  %v1946_v10 = vadd.f32 -1.0, %v800_v28  ;;  %v1687_v30 = vmul.f32 %v1599_v43, %v2606_v53  ;;  %v2236_v44 = vpop.eup %2235 }
 0x1bb   : > { %v1578_v17 = vsel %vm1576_vm14, %v1577_v22, %v1575_v18  ;;  %v1580_v45 = vmul.f32 %v2234_v39, %v3010_v29  ;;  %v1584_v31 = vand.u32 2147483648, %v3010_v29  ;;  %v693_v23 = vmul.f32 %v2230_v35, %v2933_v12  ;;  %v2238_v53 = vpop.eup %2237  ;;  %v3156_v38 = vpop.xlane.xlu1 %554 }
 0x1bc   : > { %1088 = vst.msk [vmem:[%s3067_s8] sm:$0xf] %vm1087_vm6, %v2038_v24  ;;  %v1684_v58 = vmul.f32 %v1578_v17, %v2617_v60  ;;  %v3139_v0 = vmul.f32 %v3022_v21, %v1946_v10  ;;  %v1952_v11 = vadd.f32 -1.0, %v806_v47  ;;  %v1703_v26 = vsel %vm329_vm1, %v2969_v57, %v1687_v30 }
 0x1bd   : > { %v1582_v22 = vsel %vm1581_vm15, %v3010_v29, %v1580_v45  ;;  %v1403_v36 = vmul.f32 %v2232_v46, %v2931_v9  ;;  %v1352_v32 = vadd.f32 1.0, %v2236_v44  ;;  %v2240_v60 = vpop.eup %2239  ;;  %v2057_v21 = vpack.c.bf16 %v1703_v26, %v1703_v26  ;;  %v3158_v46 = vpop.xlane.xlu0 %551 }
 0x1be   : > { %v1700_v8 = vsel %vm329_vm1, %v2971_v63, %v1684_v58  ;;  %v1585_v35 = vsel %vm1583_vm0, %v1584_v31, %v1582_v22  ;;  %2251 = vrsqrt.f32 %v3139_v0  ;;  %v2242_v57 = vpop.eup %2241  ;;  %v1351_v52 = vadd.f32 1.0, %v2238_v53 }
 0x1bf   : > { %v2054_v5 = vpack.c.bf16 %v1700_v8, %v1700_v8  ;;  %v1685_v28 = vmul.f32 %v1585_v35, %v2631_v4  ;;  %1783 = vst.msk [vmem:[%s3054_s28 + $0xc] sm:$0xf] %vm1087_vm6, %v2057_v21  ;;  %2253 = vrcp.f32 %v1352_v32  ;;  %v3162_v33 = vmul.f32 %v2242_v57, %v1952_v11  ;;  %v1264_v44 = vpop.xlane.xlu1 %1263 }
 0x1c0   : > { %v1498_v63 = vmax.f32 %v2997_v16, 1e-08  ;;  %v2244_v29 = vpop.eup %2243  ;;  %v3170_v47 = vadd.f32 1.1, %v693_v23  ;;  %v3172_v39 = vadd.f32 1.1, %v1403_v36  ;;  %v1402_v10 = vmul.f32 %v2240_v60, %v2931_v9 }
 0x1c1   : > { %1780 = vst.msk [vmem:[%s3054_s28] sm:$0xf] %vm1087_vm6, %v2054_v5  ;;  %v1701_v4 = vsel %vm329_vm1, %v2980_v27, %v1685_v28  ;;  %v788_v43 = vmax.f32 %v3012_v42, 1e-08  ;;  %v2246_v24 = vpop.eup %2245  ;;  %2255 = vrcp.f32 %v1351_v52  ;;  %v692_v16 = vmul.f32 %v2244_v29, %v2933_v12  ;;  %v3186_v58 = vpop.xlane.xlu0 %1260 }
 0x1c2   : > { %v2055_v18 = vpack.c.bf16 %v1701_v4, %v1701_v4  ;;  %2257 = vrsqrt.f32 %v3162_v33  ;;  %v805_v30 = vmul.f32 %v3170_v47, %v3170_v47  ;;  %v787_v27 = vmax.f32 %v3014_v14, 1e-08 }
 0x1c3   : > { %v1515_v17 = vmul.f32 %v3172_v39, %v3172_v39  ;;  %2259 = vrcp.f32 %v1498_v63  ;;  %v1497_v42 = vmax.f32 %v3036_v1, 1e-08  ;;  %v3189_v26 = vadd.f32 1.1, %v1402_v10  ;;  %v3214_v5 = vpop.xlane.xlu1 %769 }
 0x1c4   : > { %1781 = vst.msk [vmem:[%s3054_s28 + $0x4] sm:$0xf] %vm1087_vm6, %v2055_v18  ;;  %v1951_v31 = vadd.f32 -1.0, %v805_v30  ;;  %2261 = vrcp.f32 %v788_v43  ;;  %v992_v14 = vsub.f32 0.0, %v3098_v37  ;;  %v3194_v36 = vadd.f32 1.1, %v692_v16 }
 0x1c5   : > { %v2248_v45 = vpop.eup %2247  ;;  %v2011_v53 = vadd.f32 -1.0, %v1515_v17  ;;  %2263 = vrcp.f32 %v787_v27  ;;  %v998_v1 = vsub.f32 0.0, %v3102_v19  ;;  %v1940_v60 = vmul.f32 -1.442695, %v3076_v25 }
 0x1c6   : > { %v2250_v23 = vpop.eup %2249  ;;  %v691_v11 = vmul.f32 %v2248_v45, %v2933_v12  ;;  %v3192_v22 = vmul.f32 %v2246_v24, %v1951_v31  ;;  %2265 = vrcp.f32 %v1497_v42  ;;  %vm872_vm2 = vcmp.eq.f32.partialorder %v3139_v0, inf }
 0x1c7   : > { %v3197_v32 = vmul.f32 %v2250_v23, %v2011_v53  ;;  %v1496_v37 = vmax.f32 %v3038_v34, 1e-08  ;;  %vm874_vm3 = vcmp.eq.f32.partialorder %v3139_v0, 0.0  ;;  %v875_v8 = vand.u32 2147483648, %v3139_v0  ;;  %v3216_v34 = vpop.xlane.xlu0 %766 }
 0x1c8   : > { %2267 = vrsqrt.f32 %v3192_v22  ;;  %v3202_v21 = vadd.f32 1.1, %v691_v11  ;;  %v1514_v35 = vmul.f32 %v3189_v26, %v3189_v26  ;;  %vm914_vm4 = vcmp.eq.f32.partialorder %v3162_v33, inf }
 0x1c9   : > { %2269 = vrsqrt.f32 %v3197_v32  ;;  %vm916_vm5 = vcmp.eq.f32.partialorder %v3162_v33, 0.0  ;;  %v804_v25 = vmul.f32 %v3194_v36, %v3194_v36  ;;  %v917_v52 = vand.u32 2147483648, %v3162_v33 }
 0x1ca   : > { %2271 = vpow2.f32 %v1940_v60  ;;  %v1939_v63 = vmul.f32 -1.442695, %v3078_v54  ;;  %v1999_v29 = vmul.f32 -1.442695, %v3119_v20  ;;  %v997_v43 = vsub.f32 0.0, %v3170_v47 }
 0x1cb   : > { %v2252_v57 = vpop.eup %2251  ;;  %v803_v24 = vmul.f32 %v3202_v21, %v3202_v21  ;;  %2273 = vrcp.f32 %v1496_v37  ;;  %v1938_v18 = vmul.f32 -1.442695, %v3156_v38  ;;  %v2010_v30 = vadd.f32 -1.0, %v1514_v35  ;;  %v3239_v37 = vpop.xlane.xlu1 %763 }
 0x1cc   : > { %v871_v28 = vmul.f32 %v2252_v57, %v3139_v0  ;;  %v2254_v4 = vpop.eup %2253  ;;  %2275 = vpow2.f32 %v1939_v63  ;;  %v1950_v27 = vadd.f32 -1.0, %v804_v25  ;;  %v1937_v17 = vmul.f32 -1.442695, %v3158_v46 }
 0x1cd   : > { %v1401_v16 = vmul.f32 %v2254_v4, %v2931_v9  ;;  %2277 = vpow2.f32 %v1999_v29  ;;  %v996_v31 = vsub.f32 0.0, %v3194_v36  ;;  %v1949_v60 = vadd.f32 -1.0, %v803_v24 }
 0x1ce   : > { %v873_v10 = vsel %vm872_vm2, %v3139_v0, %v871_v28  ;;  %v2256_v54 = vpop.eup %2255  ;;  %2279 = vpow2.f32 %v1938_v18  ;;  %v1997_v0 = vmul.f32 -1.442695, %v1264_v44  ;;  %vm907_vm7 = vcmp.eq.f32.partialorder %v3192_v22, inf }
 0x1cf   : > { %v876_v20 = vsel %vm874_vm3, %v875_v8, %v873_v10  ;;  %v2258_v42 = vpop.eup %2257  ;;  %v1400_v38 = vmul.f32 %v2256_v54, %v2931_v9  ;;  %v3236_v23 = vadd.f32 1.1, %v1401_v16  ;;  %v3241_v8 = vpop.xlane.xlu0 %760  ;;  %2281 = vpow2.f32 %v1937_v17 }
 0x1d0   : > { %v976_v45 = vmul.f32 %v876_v20, %v2621_v61  ;;  %v2260_v11 = vpop.eup %2259  ;;  %v913_v53 = vmul.f32 %v2258_v42, %v3162_v33  ;;  %vm909_vm8 = vcmp.eq.f32.partialorder %v3192_v22, 0.0  ;;  %v910_v18 = vand.u32 2147483648, %v3192_v22  ;;  %v3278_v20 = vpop.xlane.xlu1 %572 }
 0x1d1   : > { %v2262_v46 = vpop.eup %2261  ;;  %v3245_v35 = vmul.f32 %v2260_v11, %v2010_v30  ;;  %v1513_v57 = vmul.f32 %v3236_v23, %v3236_v23  ;;  %v3249_v25 = vadd.f32 1.1, %v1400_v38  ;;  %v1998_v10 = vmul.f32 -1.442695, %v3121_v56 }
 0x1d2   : > { %v1008_v61 = vsel %vm329_vm1, %v992_v14, %v976_v45  ;;  %v915_v44 = vsel %vm914_vm4, %v3162_v33, %v913_v53  ;;  %v3254_v63 = vmul.f32 %v2262_v46, %v1950_v27  ;;  %v2264_v29 = vpop.eup %2263  ;;  %vm1623_vm9 = vcmp.eq.f32.partialorder %v3197_v32, inf }
 0x1d3   : > { %v2039_v28 = vpack.c.bf16 %v1008_v61, %v1008_v61  ;;  %v918_v4 = vsel %vm916_vm5, %v917_v52, %v915_v44  ;;  %2283 = vrsqrt.f32 %v3245_v35  ;;  %v2266_v14 = vpop.eup %2265  ;;  %vm1625_vm10 = vcmp.eq.f32.partialorder %v3197_v32, 0.0  ;;  %v3280_v27 = vpop.xlane.xlu0 %569 }
 0x1d4   : > { %v982_v24 = vmul.f32 %v918_v4, %v2673_v41  ;;  %2285 = vrsqrt.f32 %v3254_v63  ;;  %v3269_v33 = vmul.f32 %v2264_v29, %v1949_v60  ;;  %v2009_v52 = vadd.f32 -1.0, %v1513_v57 }
 0x1d5   : > { %1089 = vst.msk [vmem:[%s3067_s8 + $0x4] sm:$0xf] %vm1087_vm6, %v2039_v28  ;;  %v2268_v16 = vpop.eup %2267  ;;  %v1512_v56 = vmul.f32 %v3249_v25, %v3249_v25  ;;  %2287 = vpow2.f32 %v1997_v0  ;;  %v1626_v19 = vand.u32 2147483648, %v3197_v32  ;;  %v995_v38 = vsub.f32 0.0, %v3202_v21 }
 0x1d6   : > { %v2270_v30 = vpop.eup %2269  ;;  %v1014_v41 = vsel %vm329_vm1, %v998_v1, %v982_v24  ;;  %v906_v54 = vmul.f32 %v2268_v16, %v3192_v22  ;;  %2289 = vrsqrt.f32 %v3269_v33  ;;  %v3289_v11 = vmul.f32 %v2266_v14, %v2009_v52 }
 0x1d7   : > { %v2272_v17 = vpop.eup %2271  ;;  %v2045_v42 = vpack.c.bf16 %v1014_v41, %v1014_v41  ;;  %v1622_v45 = vmul.f32 %v2270_v30, %v3197_v32  ;;  %2291 = vpow2.f32 %v1998_v10  ;;  %v2008_v46 = vadd.f32 -1.0, %v1512_v56  ;;  %v3315_v16 = vpop.xlane.xlu0 %1278 }
 0x1d8   : > { %v908_v1 = vsel %vm907_vm7, %v3192_v22, %v906_v54  ;;  %v2274_v53 = vpop.eup %2273  ;;  %v649_v61 = vadd.f32 1.0, %v2272_v17  ;;  %2293 = vrsqrt.f32 %v3289_v11  ;;  %v1996_v29 = vmul.f32 -1.442695, %v3186_v58  ;;  %v3313_v58 = vpop.xlane.xlu1 %1281 }
 0x1d9   : > { %1095 = vst.msk [vmem:[%s3067_s8 + $0x1c] sm:$0xf] %vm1087_vm6, %v2045_v42  ;;  %v911_v60 = vsel %vm909_vm8, %v910_v18, %v908_v1  ;;  %v1624_v0 = vsel %vm1623_vm9, %v3197_v32, %v1622_v45  ;;  %v2276_v57 = vpop.eup %2275  ;;  %v3304_v14 = vmul.f32 %v2274_v53, %v2008_v46  ;;  %v794_v24 = vmax.f32 %v3214_v5, 1e-08 }
 0x1da   : > { %v981_v28 = vmul.f32 %v911_v60, %v2669_v40  ;;  %v1627_v44 = vsel %vm1625_vm10, %v1626_v19, %v1624_v0  ;;  %v2278_v4 = vpop.eup %2277  ;;  %v793_v18 = vmax.f32 %v3216_v34, 1e-08  ;;  %2295 = vrcp.f32 %v649_v61 }
 0x1db   : > { %v1691_v22 = vmul.f32 %v1627_v44, %v2691_v51  ;;  %v648_v32 = vadd.f32 1.0, %v2276_v57  ;;  %v792_v10 = vmax.f32 %v3239_v37, 1e-08  ;;  %v2280_v51 = vpop.eup %2279  ;;  %2297 = vrsqrt.f32 %v3304_v14  ;;  %v3340_v1 = vpop.xlane.xlu0 %563 }
 0x1dc   : > { %v1013_v40 = vsel %vm329_vm1, %v997_v43, %v981_v28  ;;  %v1358_v47 = vadd.f32 1.0, %v2278_v4  ;;  %vm1616_vm11 = vcmp.eq.f32.partialorder %v3245_v35, inf  ;;  %vm1618_vm12 = vcmp.eq.f32.partialorder %v3245_v35, 0.0  ;;  %v2282_v43 = vpop.eup %2281  ;;  %v3338_v19 = vpop.xlane.xlu1 %566 }
 0x1dd   : > { %v2044_v52 = vpack.c.bf16 %v1013_v40, %v1013_v40  ;;  %v1707_v5 = vsel %vm329_vm1, %v3172_v39, %v1691_v22  ;;  %2299 = vrcp.f32 %v648_v32  ;;  %v1619_v37 = vand.u32 2147483648, %v3245_v35 }
 0x1de   : > { %v2061_v34 = vpack.c.bf16 %v1707_v5, %v1707_v5  ;;  %vm900_vm13 = vcmp.eq.f32.partialorder %v3254_v63, inf  ;;  %vm902_vm14 = vcmp.eq.f32.partialorder %v3254_v63, 0.0  ;;  %v647_v30 = vadd.f32 1.0, %v2280_v51 }
 0x1df   : > { %1094 = vst.msk [vmem:[%s3067_s8 + $0x18] sm:$0xf] %vm1087_vm6, %v2044_v52  ;;  %v903_v41 = vand.u32 2147483648, %v3254_v63  ;;  %vm893_vm15 = vcmp.eq.f32.partialorder %v3269_v33, inf  ;;  %v646_v54 = vadd.f32 1.0, %v2282_v43  ;;  %2301 = vpow2.f32 %v1996_v29  ;;  %v1273_v5 = vpop.xlane.xlu0 %1272 }
 0x1e0   : > { %v2284_v39 = vpop.eup %2283  ;;  %1787 = vst.msk [vmem:[%s3054_s28 + $0x1c] sm:$0xf] %vm1087_vm6, %v2061_v34  ;;  %vm895_vm0 = vcmp.eq.f32.partialorder %v3269_v33, 0.0  ;;  %v896_v42 = vand.u32 2147483648, %v3269_v33  ;;  %2303 = vrcp.f32 %v1358_v47  ;;  %vm1609_vm2 = vcmp.eq.f32.partialorder %v3289_v11, inf  ;;  %v1276_v52 = vpop.xlane.xlu1 %1275 }
 0x1e1   : > { %v2286_v56 = vpop.eup %2285  ;;  %v1615_v17 = vmul.f32 %v2284_v39, %v3245_v35  ;;  %vm1611_vm3 = vcmp.eq.f32.partialorder %v3289_v11, 0.0  ;;  %2305 = vrcp.f32 %v647_v30  ;;  %v1612_v0 = vand.u32 2147483648, %v3289_v11 }
 0x1e2   : > { %v899_v45 = vmul.f32 %v2286_v56, %v3254_v63  ;;  %v2288_v53 = vpop.eup %2287  ;;  %2307 = vrcp.f32 %v646_v54  ;;  %v791_v46 = vmax.f32 %v3241_v8, 1e-08  ;;  %vm1602_vm4 = vcmp.eq.f32.partialorder %v3304_v14, inf }
 0x1e3   : > { %v1617_v60 = vsel %vm1616_vm11, %v3245_v35, %v1615_v17  ;;  %v2290_v61 = vpop.eup %2289  ;;  %v1356_v44 = vadd.f32 1.0, %v2288_v53  ;;  %2309 = vrcp.f32 %v794_v24  ;;  %v1605_v40 = vand.u32 2147483648, %v3304_v14 }
 0x1e4   : > { %v1620_v57 = vsel %vm1618_vm12, %v1619_v37, %v1617_v60  ;;  %v901_v28 = vsel %vm900_vm13, %v3254_v63, %v899_v45  ;;  %v2292_v29 = vpop.eup %2291  ;;  %v892_v8 = vmul.f32 %v2290_v61, %v3269_v33  ;;  %2311 = vrcp.f32 %v793_v18  ;;  %v1473_v60 = vpop.xlane.xlu1 %1472 }
 0x1e5   : > { %v1690_v4 = vmul.f32 %v1620_v57, %v2687_v50  ;;  %v904_v22 = vsel %vm902_vm14, %v903_v41, %v901_v28  ;;  %2313 = vrcp.f32 %v1356_v44  ;;  %v1944_v32 = vmul.f32 -1.442695, %v3278_v20  ;;  %v2294_v51 = vpop.eup %2293 }
 0x1e6   : > { %v980_v35 = vmul.f32 %v904_v22, %v2705_v62  ;;  %v894_v50 = vsel %vm893_vm15, %v3269_v33, %v892_v8  ;;  %2315 = vrcp.f32 %v792_v10  ;;  %v1943_v63 = vmul.f32 -1.442695, %v3280_v27 }
 0x1e7   : > { %v1706_v24 = vsel %vm329_vm1, %v3189_v26, %v1690_v4  ;;  %v897_v20 = vsel %vm895_vm0, %v896_v42, %v894_v50  ;;  %v1608_v26 = vmul.f32 %v2294_v51, %v3289_v11  ;;  %v2296_v47 = vpop.eup %2295  ;;  %v1357_v43 = vadd.f32 1.0, %v2292_v29 }
 0x1e8   : > { %v2060_v18 = vpack.c.bf16 %v1706_v24, %v1706_v24  ;;  %v1012_v62 = vsel %vm329_vm1, %v996_v31, %v980_v35  ;;  %v979_v10 = vmul.f32 %v897_v20, %v2701_v59  ;;  %2317 = vrcp.f32 %v791_v46  ;;  %v2298_v27 = vpop.eup %2297 }
 0x1e9   : > { %v2043_v34 = vpack.c.bf16 %v1012_v62, %v1012_v62  ;;  %v1610_v36 = vsel %vm1609_vm2, %v3289_v11, %v1608_v26  ;;  %v698_v31 = vmul.f32 %v2296_v47, %v2933_v12  ;;  %2319 = vpow2.f32 %v1944_v32 }
 0x1ea   : > { %1786 = vst.msk [vmem:[%s3054_s28 + $0x18] sm:$0xf] %vm1087_vm6, %v2060_v18  ;;  %v2003_v33 = vmul.f32 -1.442695, %v3313_v58  ;;  %v2300_v37 = vpop.eup %2299  ;;  %v1011_v59 = vsel %vm329_vm1, %v995_v38, %v979_v10  ;;  %v1613_v30 = vsel %vm1611_vm3, %v1612_v0, %v1610_v36  ;;  %v1601_v39 = vmul.f32 %v2298_v27, %v3304_v14  ;;  %v3407_v0 = vpop.xlane.xlu0 %1469 }
 0x1eb   : > { %1093 = vst.msk [vmem:[%s3067_s8 + $0x14] sm:$0xf] %vm1087_vm6, %v2043_v34  ;;  %2321 = vpow2.f32 %v1943_v63  ;;  %v2042_v41 = vpack.c.bf16 %v1011_v59, %v1011_v59  ;;  %v1689_v54 = vmul.f32 %v1613_v30, %v2719_v7  ;;  %v697_v58 = vmul.f32 %v2300_v37, %v2933_v12  ;;  %v1479_v63 = vpop.xlane.xlu1 %1478 }
 0x1ec   : > { %v3393_v56 = vadd.f32 1.1, %v698_v31  ;;  %v2302_v17 = vpop.eup %2301  ;;  %v1603_v21 = vsel %vm1602_vm4, %v3304_v14, %v1601_v39  ;;  %vm1604_vm5 = vcmp.eq.f32.partialorder %v3304_v14, 0.0  ;;  %2323 = vrcp.f32 %v1357_v43 }
 0x1ed   : > { %v2002_v38 = vmul.f32 -1.442695, %v3315_v16  ;;  %v2304_v11 = vpop.eup %2303  ;;  %1092 = vst.msk [vmem:[%s3067_s8 + $0x10] sm:$0xf] %vm1087_vm6, %v2042_v41  ;;  %v1705_v7 = vsel %vm329_vm1, %v3236_v23, %v1689_v54  ;;  %v1606_v42 = vsel %vm1604_vm5, %v1605_v40, %v1603_v21  ;;  %v1355_v45 = vadd.f32 1.0, %v2302_v17 }
 0x1ee   : > { %v810_v53 = vmul.f32 %v3393_v56, %v3393_v56  ;;  %v2306_v14 = vpop.eup %2305  ;;  %v2059_v46 = vpack.c.bf16 %v1705_v7, %v1705_v7  ;;  %v1688_v16 = vmul.f32 %v1606_v42, %v2715_v6  ;;  %2325 = vpow2.f32 %v2003_v33  ;;  %v3432_v18 = vpop.xlane.xlu0 %778 }
 0x1ef   : > { %v1942_v61 = vmul.f32 -1.442695, %v3338_v19  ;;  %v2308_v57 = vpop.eup %2307  ;;  %v696_v28 = vmul.f32 %v2306_v14, %v2933_v12  ;;  %2327 = vrcp.f32 %v1355_v45  ;;  %v3412_v44 = vadd.f32 1.1, %v697_v58  ;;  %v782_v54 = vpop.xlane.xlu1 %781 }
 0x1f0   : > { %v1956_v23 = vadd.f32 -1.0, %v810_v53  ;;  %v2310_v29 = vpop.eup %2309  ;;  %1785 = vst.msk [vmem:[%s3054_s28 + $0x14] sm:$0xf] %vm1087_vm6, %v2059_v46  ;;  %v1704_v4 = vsel %vm329_vm1, %v3249_v25, %v1688_v16  ;;  %v695_v6 = vmul.f32 %v2308_v57, %v2933_v12  ;;  %v1941_v22 = vmul.f32 -1.442695, %v3340_v1 }
 0x1f1   : > { %v2312_v19 = vpop.eup %2311  ;;  %v2058_v8 = vpack.c.bf16 %v1704_v4, %v1704_v4  ;;  %v809_v40 = vmul.f32 %v3412_v44, %v3412_v44  ;;  %2329 = vpow2.f32 %v2002_v38  ;;  %v3425_v51 = vadd.f32 1.1, %v696_v28 }
 0x1f2   : > { %v3421_v35 = vmul.f32 %v2310_v29, %v1956_v23  ;;  %v2314_v32 = vpop.eup %2313  ;;  %v3427_v24 = vadd.f32 1.1, %v695_v6  ;;  %2331 = vpow2.f32 %v1942_v61  ;;  %v2001_v50 = vmul.f32 -1.442695, %v1276_v52  ;;  %v3449_v58 = vpop.xlane.xlu0 %772 }
 0x1f3   : > { %v2316_v25 = vpop.eup %2315  ;;  %1784 = vst.msk [vmem:[%s3054_s28 + $0x10] sm:$0xf] %vm1087_vm6, %v2058_v8  ;;  %v2000_v1 = vmul.f32 -1.442695, %v1273_v5  ;;  %v1405_v62 = vmul.f32 %v2314_v32, %v2931_v9  ;;  %v1955_v20 = vadd.f32 -1.0, %v809_v40  ;;  %v808_v26 = vmul.f32 %v3425_v51, %v3425_v51  ;;  %v776_v4 = vpop.xlane.xlu1 %775 }
 0x1f4   : > { %2333 = vrsqrt.f32 %v3421_v35  ;;  %v807_v34 = vmul.f32 %v3427_v24, %v3427_v24  ;;  %v1501_v52 = vmax.f32 %v1473_v60, 1e-08  ;;  %v1407_v43 = vmul.f32 %v2304_v11, %v2931_v9 }
 0x1f5   : > { %v2318_v47 = vpop.eup %2317  ;;  %2335 = vpow2.f32 %v1941_v22  ;;  %v3440_v27 = vmul.f32 %v2312_v19, %v1955_v20  ;;  %v1954_v5 = vadd.f32 -1.0, %v808_v26  ;;  %v3443_v37 = vadd.f32 1.1, %v1405_v62 }
 0x1f6   : > { %v2320_v10 = vpop.eup %2319  ;;  %2337 = vpow2.f32 %v2001_v50  ;;  %v1953_v31 = vadd.f32 -1.0, %v807_v34  ;;  %v3451_v17 = vadd.f32 1.1, %v1407_v43  ;;  %v1500_v38 = vmax.f32 %v3407_v0, 1e-08 }
 0x1f7   : > { %v653_v33 = vadd.f32 1.0, %v2320_v10  ;;  %2339 = vpow2.f32 %v2000_v1  ;;  %v3445_v30 = vmul.f32 %v2316_v25, %v1954_v5  ;;  %v1503_v11 = vmax.f32 %v1479_v63, 1e-08 }
 0x1f8   : > { %v2322_v36 = vpop.eup %2321  ;;  %2341 = vrsqrt.f32 %v3440_v27  ;;  %v3447_v39 = vmul.f32 %v2318_v47, %v1953_v31  ;;  %v797_v7 = vmax.f32 %v3432_v18, 1e-08  ;;  %v798_v53 = vmax.f32 %v782_v54, 1e-08  ;;  %v1476_v54 = vpop.xlane.xlu0 %1475 }
 0x1f9   : > { %v2324_v59 = vpop.eup %2323  ;;  %2343 = vrcp.f32 %v653_v33  ;;  %v652_v41 = vadd.f32 1.0, %v2322_v36  ;;  %v795_v60 = vmax.f32 %v3449_v58, 1e-08  ;;  %v1002_v14 = vsub.f32 0.0, %v3393_v56 }
 0x1fa   : > { %2345 = vrcp.f32 %v1501_v52  ;;  %v3457_v45 = vmul.f32 %v2324_v59, %v2931_v9  ;;  %v1001_v46 = vsub.f32 0.0, %v3412_v44  ;;  %v1517_v0 = vmul.f32 %v3443_v37, %v3443_v37 }
 0x1fb   : > { %v2326_v21 = vpop.eup %2325  ;;  %2347 = vrsqrt.f32 %v3445_v30  ;;  %vm942_vm7 = vcmp.eq.f32.partialorder %v3421_v35, inf  ;;  %vm944_vm8 = vcmp.eq.f32.partialorder %v3421_v35, 0.0  ;;  %v945_v61 = vand.u32 2147483648, %v3421_v35 }
 0x1fc   : > { %v2328_v42 = vpop.eup %2327  ;;  %2349 = vrsqrt.f32 %v3447_v39  ;;  %v3470_v57 = vmul.f32 %v3451_v17, %v3451_v17  ;;  %v1000_v23 = vsub.f32 0.0, %v3425_v51  ;;  %v1362_v29 = vadd.f32 1.0, %v2326_v21 }
 0x1fd   : > { %2351 = vrcp.f32 %v652_v41  ;;  %v1404_v56 = vmul.f32 %v2328_v42, %v2931_v9  ;;  %vm935_vm9 = vcmp.eq.f32.partialorder %v3440_v27, inf  ;;  %vm937_vm10 = vcmp.eq.f32.partialorder %v3440_v27, 0.0 }
 0x1fe   : > { %v2330_v16 = vpop.eup %2329  ;;  %2353 = vrcp.f32 %v1500_v38  ;;  %v999_v22 = vsub.f32 0.0, %v3427_v24  ;;  %v938_v40 = vand.u32 2147483648, %v3440_v27  ;;  %v2013_v32 = vadd.f32 -1.0, %v1517_v0 }
 0x1ff   : > { %v2332_v28 = vpop.eup %2331  ;;  %2355 = vrcp.f32 %v1503_v11  ;;  %vm928_vm11 = vcmp.eq.f32.partialorder %v3445_v30, inf  ;;  %v1361_v25 = vadd.f32 1.0, %v2330_v16  ;;  %v796_v1 = vmax.f32 %v776_v4, 1e-08 }
 0x200   : > { %v651_v19 = vadd.f32 1.0, %v2332_v28  ;;  %vm930_vm12 = vcmp.eq.f32.partialorder %v3445_v30, 0.0  ;;  %v3484_v20 = vadd.f32 1.1, %v1404_v56  ;;  %v931_v34 = vand.u32 2147483648, %v3445_v30 }
 0x201   : > { %v2334_v6 = vpop.eup %2333  ;;  %vm921_vm13 = vcmp.eq.f32.partialorder %v3447_v39, inf  ;;  %vm923_vm14 = vcmp.eq.f32.partialorder %v3447_v39, 0.0  ;;  %v924_v33 = vand.u32 2147483648, %v3447_v39  ;;  %v3508_v16 = vadd.f32 1.1, %v3457_v45 }
 0x202   : > { %v941_v8 = vmul.f32 %v2334_v6, %v3421_v35  ;;  %v2336_v50 = vpop.eup %2335  ;;  %2357 = vrcp.f32 %v651_v19 }
 0x203   : > { %v2338_v63 = vpop.eup %2337  ;;  %2359 = vrcp.f32 %v1362_v29  ;;  %v650_v62 = vadd.f32 1.0, %v2336_v50  ;;  %v1518_v24 = vmul.f32 %v3508_v16, %v3508_v16 }
 0x204   : > { %v943_v18 = vsel %vm942_vm7, %v3421_v35, %v941_v8  ;;  %v2340_v26 = vpop.eup %2339  ;;  %v1360_v52 = vadd.f32 1.0, %v2338_v63  ;;  %2361 = vrcp.f32 %v798_v53  ;;  %v3532_v8 = vpop.xlane.xlu1 %1484 }
 0x205   : > { %v946_v47 = vsel %vm944_vm8, %v945_v61, %v943_v18  ;;  %v2342_v10 = vpop.eup %2341  ;;  %2363 = vrcp.f32 %v650_v62  ;;  %v1359_v5 = vadd.f32 1.0, %v2340_v26 }
 0x206   : > { %v986_v43 = vmul.f32 %v946_v47, %v2771_v49  ;;  %v2344_v36 = vpop.eup %2343  ;;  %v934_v31 = vmul.f32 %v2342_v10, %v3440_v27  ;;  %2365 = vrcp.f32 %v1361_v25  ;;  %v1516_v49 = vmul.f32 %v3484_v20, %v3484_v20 }
 0x207   : > { %v2346_v35 = vpop.eup %2345  ;;  %v702_v41 = vmul.f32 %v2344_v36, %v2933_v12  ;;  %2367 = vrcp.f32 %v797_v7 }
 0x208   : > { %v1018_v59 = vsel %vm329_vm1, %v1002_v14, %v986_v43  ;;  %v2348_v21 = vpop.eup %2347  ;;  %v936_v11 = vsel %vm935_vm9, %v3440_v27, %v934_v31  ;;  %2369 = vrcp.f32 %v1360_v52  ;;  %v3502_v42 = vmul.f32 %v2346_v35, %v2013_v32 }
 0x209   : > { %v2049_v38 = vpack.c.bf16 %v1018_v59, %v1018_v59  ;;  %v2350_v53 = vpop.eup %2349  ;;  %v939_v14 = vsel %vm937_vm10, %v938_v40, %v936_v11  ;;  %v927_v0 = vmul.f32 %v2348_v21, %v3445_v30  ;;  %2371 = vrcp.f32 %v1359_v5 }
 0x20a   : > { %v2352_v7 = vpop.eup %2351  ;;  %v985_v61 = vmul.f32 %v939_v14, %v2767_v48  ;;  %v920_v28 = vmul.f32 %v2350_v53, %v3447_v39  ;;  %2373 = vrsqrt.f32 %v3502_v42  ;;  %v3515_v56 = vadd.f32 1.1, %v702_v41 }
 0x20b   : > { %1099 = vst.msk [vmem:[%s3067_s8 + $0x2c] sm:$0xf] %vm1087_vm6, %v2049_v38  ;;  %v929_v27 = vsel %vm928_vm11, %v3445_v30, %v927_v0  ;;  %v701_v29 = vmul.f32 %v2352_v7, %v2933_v12  ;;  %v2012_v4 = vadd.f32 -1.0, %v1516_v49  ;;  %2375 = vrcp.f32 %v796_v1  ;;  %v2354_v45 = vpop.eup %2353  ;;  %v3539_v30 = vpop.xlane.xlu0 %1481 }
 0x20c   : > { %v1017_v48 = vsel %vm329_vm1, %v1001_v46, %v985_v61  ;;  %v932_v6 = vsel %vm930_vm12, %v931_v34, %v929_v27  ;;  %v922_v19 = vsel %vm921_vm13, %v3447_v39, %v920_v28  ;;  %2377 = vrcp.f32 %v795_v60  ;;  %v2356_v50 = vpop.eup %2355 }
 0x20d   : > { %v2048_v40 = vpack.c.bf16 %v1017_v48, %v1017_v48  ;;  %v984_v32 = vmul.f32 %v932_v6, %v2791_v3  ;;  %v925_v44 = vsel %vm923_vm14, %v924_v33, %v922_v19  ;;  %v3537_v46 = vmul.f32 %v2354_v45, %v2012_v4 }
 0x20e   : > { %v983_v25 = vmul.f32 %v925_v44, %v2787_v2  ;;  %v3542_v1 = vadd.f32 1.1, %v701_v29  ;;  %v814_v58 = vmul.f32 %v3515_v56, %v3515_v56  ;;  %v1502_v60 = vmax.f32 %v1476_v54, 1e-08 }
 0x20f   : > { %v2358_v63 = vpop.eup %2357  ;;  %1098 = vst.msk [vmem:[%s3067_s8 + $0x28] sm:$0xf] %vm1087_vm6, %v2048_v40  ;;  %v1016_v3 = vsel %vm329_vm1, %v1000_v23, %v984_v32  ;;  %2379 = vrsqrt.f32 %v3537_v46  ;;  %v2015_v39 = vadd.f32 -1.0, %v3470_v57  ;;  %v3575_v36 = vpop.xlane.xlu0 %1487  ;;  %v1505_v59 = vmax.f32 %v3532_v8, 1e-08 }
 0x210   : > { %v2360_v2 = vpop.eup %2359  ;;  %v2047_v18 = vpack.c.bf16 %v1016_v3, %v1016_v3  ;;  %v1015_v62 = vsel %vm329_vm1, %v999_v22, %v983_v25  ;;  %v700_v26 = vmul.f32 %v2358_v63, %v2933_v12  ;;  %v813_v23 = vmul.f32 %v3542_v1, %v3542_v1  ;;  %v3569_v22 = vpop.xlane.xlu1 %1490 }
 0x211   : > { %v2362_v47 = vpop.eup %2361  ;;  %v2046_v34 = vpack.c.bf16 %v1015_v62, %v1015_v62  ;;  %v3559_v51 = vmul.f32 %v2356_v50, %v2015_v39  ;;  %v1960_v57 = vadd.f32 -1.0, %v814_v58  ;;  %2381 = vrcp.f32 %v1502_v60 }
 0x212   : > { %v2364_v52 = vpop.eup %2363  ;;  %1097 = vst.msk [vmem:[%s3067_s8 + $0x24] sm:$0xf] %vm1087_vm6, %v2047_v18  ;;  %v3565_v10 = vadd.f32 1.1, %v700_v26  ;;  %v1959_v33 = vadd.f32 -1.0, %v813_v23  ;;  %v2014_v53 = vadd.f32 -1.0, %v1518_v24  ;;  %v1411_v48 = vmul.f32 %v2360_v2, %v2931_v9 }
 0x213   : > { %v2366_v43 = vpop.eup %2365  ;;  %1096 = vst.msk [vmem:[%s3067_s8 + $0x20] sm:$0xf] %vm1087_vm6, %v2046_v34  ;;  %v699_v5 = vmul.f32 %v2364_v52, %v2933_v12  ;;  %2383 = vrsqrt.f32 %v3559_v51  ;;  %v3577_v35 = vmul.f32 %v2362_v47, %v1960_v57  ;;  %v1504_v21 = vmax.f32 %v3539_v30, 1e-08 }
 0x214   : > { %v2368_v31 = vpop.eup %2367  ;;  %v812_v54 = vmul.f32 %v3565_v10, %v3565_v10  ;;  %v1507_v12 = vmax.f32 %v3569_v22, 1e-08  ;;  %v1506_v14 = vmax.f32 %v3575_v36, 1e-08  ;;  %vm1637_vm15 = vcmp.eq.f32.partialorder %v3502_v42, inf }
 0x215   : > { %v2370_v41 = vpop.eup %2369  ;;  %v3580_v49 = vadd.f32 1.1, %v699_v5  ;;  %v3586_v11 = vmul.f32 %v2368_v31, %v1959_v33  ;;  %2385 = vrsqrt.f32 %v3577_v35  ;;  %vm1639_vm0 = vcmp.eq.f32.partialorder %v3502_v42, 0.0 }
 0x216   : > { %v2372_v38 = vpop.eup %2371  ;;  %v1958_v61 = vadd.f32 -1.0, %v812_v54  ;;  %v1409_v27 = vmul.f32 %v2370_v41, %v2931_v9  ;;  %v1640_v4 = vand.u32 2147483648, %v3502_v42  ;;  %v3600_v6 = vmul.f32 %v2366_v43, %v2931_v9  ;;  %v3805_v41 = vld [vmem:[#allocation5_spill] sm:$0xff] }
 0x217   : > { %v2374_v0 = vpop.eup %2373  ;;  %v811_v7 = vmul.f32 %v3580_v49, %v3580_v49  ;;  %2387 = vrsqrt.f32 %v3586_v11  ;;  %vm1630_vm2 = vcmp.eq.f32.partialorder %v3537_v46, inf  ;;  %vm1632_vm3 = vcmp.eq.f32.partialorder %v3537_v46, 0.0 }
 0x218   : > { %v2376_v28 = vpop.eup %2375  ;;  %v1636_v29 = vmul.f32 %v2374_v0, %v3502_v42  ;;  %2389 = vrcp.f32 %v1505_v59  ;;  %v1633_v44 = vand.u32 2147483648, %v3537_v46  ;;  %v1005_v58 = vsub.f32 0.0, %v3542_v1 }
 0x219   : > { %v2378_v45 = vpop.eup %2377  ;;  %v1957_v19 = vadd.f32 -1.0, %v811_v7  ;;  %v3602_v8 = vmul.f32 %v2376_v28, %v1958_v61  ;;  %v1006_v60 = vsub.f32 0.0, %v3515_v56  ;;  %v3616_v63 = vadd.f32 1.1, %v1409_v27 }
 0x21a   : > { %v1638_v40 = vsel %vm1637_vm15, %v3502_v42, %v1636_v29  ;;  %v1408_v3 = vmul.f32 %v2372_v38, %v2931_v9  ;;  %vm1651_vm4 = vcmp.eq.f32.partialorder %v3559_v51, inf  ;;  %vm1653_vm5 = vcmp.eq.f32.partialorder %v3559_v51, 0.0 }
 0x21b   : > { %v1641_v32 = vsel %vm1639_vm0, %v1640_v4, %v1638_v40  ;;  %v3610_v30 = vmul.f32 %v2378_v45, %v1957_v19  ;;  %2391 = vrsqrt.f32 %v3602_v8  ;;  %v1004_v2 = vsub.f32 0.0, %v3565_v10  ;;  %v3806_v4 = vld [vmem:[#allocation8_spill] sm:$0xff] }
 0x21c   : > { %v2380_v50 = vpop.eup %2379  ;;  %v1693_v25 = vmul.f32 %v1641_v32, %v2841_v15  ;;  %v1654_v15 = vand.u32 2147483648, %v3559_v51  ;;  %vm970_vm7 = vcmp.eq.f32.partialorder %v3577_v35, inf  ;;  %v1521_v34 = vmul.f32 %v3616_v63, %v3616_v63 }
 0x21d   : > { %v1629_v42 = vmul.f32 %v2380_v50, %v3537_v46  ;;  %2393 = vrsqrt.f32 %v3610_v30  ;;  %vm972_vm8 = vcmp.eq.f32.partialorder %v3577_v35, 0.0  ;;  %v3643_v57 = vadd.f32 1.1, %v1408_v3 }
 0x21e   : > { %v1709_v39 = vsel %vm329_vm1, %v3443_v37, %v1693_v25  ;;  %v2382_v18 = vpop.eup %2381  ;;  %2395 = vrcp.f32 %v1504_v21  ;;  %vm963_vm9 = vcmp.eq.f32.partialorder %v3586_v11, inf  ;;  %vm965_vm10 = vcmp.eq.f32.partialorder %v3586_v11, 0.0 }
 0x21f   : > { %v2063_v62 = vpack.c.bf16 %v1709_v39, %v1709_v39  ;;  %v1631_v9 = vsel %vm1630_vm2, %v3537_v46, %v1629_v42  ;;  %v3634_v37 = vmul.f32 %v2382_v18, %v2014_v53  ;;  %2397 = vrcp.f32 %v1507_v12 }
 0x220   : > { %v2384_v26 = vpop.eup %2383  ;;  %v1634_v47 = vsel %vm1632_vm3, %v1633_v44, %v1631_v9  ;;  %v973_v46 = vand.u32 2147483648, %v3577_v35  ;;  %v3655_v43 = vadd.f32 1.1, %v1411_v48  ;;  %v2017_v33 = vadd.f32 -1.0, %v1521_v34 }
 0x221   : > { %1789 = vst.msk [vmem:[%s3054_s28 + $0x24] sm:$0xf] %vm1087_vm6, %v2063_v62  ;;  %v1692_v23 = vmul.f32 %v1634_v47, %v2836_v55  ;;  %v1650_v52 = vmul.f32 %v2384_v26, %v3559_v51  ;;  %2399 = vrsqrt.f32 %v3634_v37  ;;  %v966_v21 = vand.u32 2147483648, %v3586_v11  ;;  %v3808_v26 = vld [vmem:[#allocation10_spill] sm:$0xff] }
 0x222   : > { %v2386_v24 = vpop.eup %2385  ;;  %2401 = vrcp.f32 %v1506_v14  ;;  %vm956_vm11 = vcmp.eq.f32.partialorder %v3602_v8, inf  ;;  %vm958_vm12 = vcmp.eq.f32.partialorder %v3602_v8, 0.0  ;;  %v959_v38 = vand.u32 2147483648, %v3602_v8 }
 0x223   : > { %v1708_v55 = vsel %vm329_vm1, %v3484_v20, %v1692_v23  ;;  %v1652_v22 = vsel %vm1651_vm4, %v3559_v51, %v1650_v52  ;;  %v969_v31 = vmul.f32 %v2386_v24, %v3577_v35  ;;  %v1520_v20 = vmul.f32 %v3643_v57, %v3643_v57  ;;  %v3809_v52 = vld [vmem:[#allocation7_spill] sm:$0xff] }
 0x224   : > { %v2062_v5 = vpack.c.bf16 %v1708_v55, %v1708_v55  ;;  %v1655_v36 = vsel %vm1653_vm5, %v1654_v15, %v1652_v22  ;;  %v2388_v59 = vpop.eup %2387  ;;  %v1523_v7 = vmul.f32 %v3655_v43, %v3655_v43  ;;  %v3681_v61 = vadd.f32 1.1, %v3600_v6  ;;  %v3807_v6 = vld [vmem:[#allocation6_spill] sm:$0xff] }
 0x225   : > { %v1695_v54 = vmul.f32 %v1655_v36, %v3805_v41  ;;  %v962_v12 = vmul.f32 %v2388_v59, %v3586_v11  ;;  %v971_v51 = vsel %vm970_vm7, %v3577_v35, %v969_v31  ;;  %v2390_v53 = vpop.eup %2389  ;;  %vm949_vm13 = vcmp.eq.f32.partialorder %v3610_v30, inf  ;;  %v3810_v59 = vld [vmem:[#allocation9_spill] sm:$0xff] }
 0x226   : > { %1788 = vst.msk [vmem:[%s3054_s28 + $0x20] sm:$0xf] %vm1087_vm6, %v2062_v5  ;;  %v974_v0 = vsel %vm972_vm8, %v973_v46, %v971_v51  ;;  %v1567_v48 = vmul.f32 %v2390_v53, %v2017_v33  ;;  %v2016_v19 = vadd.f32 -1.0, %v1520_v20  ;;  %vm951_vm14 = vcmp.eq.f32.partialorder %v3610_v30, 0.0 }
 0x227   : > { %v1711_v14 = vsel %vm329_vm1, %v3451_v17, %v1695_v54  ;;  %v964_v29 = vsel %vm963_vm9, %v3586_v11, %v962_v12  ;;  %v990_v45 = vmul.f32 %v974_v0, %v3806_v4  ;;  %v952_v25 = vand.u32 2147483648, %v3610_v30 }
 0x228   : > { %v2392_v28 = vpop.eup %2391  ;;  %v2065_v27 = vpack.c.bf16 %v1711_v14, %v1711_v14  ;;  %v967_v17 = vsel %vm965_vm10, %v966_v21, %v964_v29  ;;  %2403 = vrsqrt.f32 %v1567_v48  ;;  %v2019_v39 = vadd.f32 -1.0, %v1523_v7  ;;  %v3811_v14 = vld [vmem:[#allocation12_spill] sm:$0xff] }
 0x229   : > { %v955_v35 = vmul.f32 %v2392_v28, %v3602_v8  ;;  %v989_v32 = vmul.f32 %v967_v17, %v3807_v6  ;;  %v1022_v44 = vsel %vm329_vm1, %v1006_v60, %v990_v45  ;;  %v1522_v15 = vmul.f32 %v3681_v61, %v3681_v61 }
 0x22a   : > { %v2394_v40 = vpop.eup %2393  ;;  %1791 = vst.msk [vmem:[%s3054_s28 + $0x2c] sm:$0xf] %vm1087_vm6, %v2065_v27  ;;  %v2053_v11 = vpack.c.bf16 %v1022_v44, %v1022_v44  ;;  %v1003_v23 = vsub.f32 0.0, %v3580_v49  ;;  %vm1644_vm15 = vcmp.eq.f32.partialorder %v3634_v37, inf  ;;  %v1647_v49 = vand.u32 2147483648, %v3634_v37 }
 0x22b   : > { %v948_v50 = vmul.f32 %v2394_v40, %v3610_v30  ;;  %v957_v3 = vsel %vm956_vm11, %v3602_v8, %v955_v35  ;;  %v2396_v42 = vpop.eup %2395  ;;  %v1021_v56 = vsel %vm329_vm1, %v1005_v58, %v989_v32  ;;  %v2018_v5 = vadd.f32 -1.0, %v1522_v15  ;;  %v3814_v15 = vld [vmem:[#allocation13_spill] sm:$0xff] }
 0x22c   : > { %v960_v60 = vsel %vm958_vm12, %v959_v38, %v957_v3  ;;  %v2398_v18 = vpop.eup %2397  ;;  %v2052_v62 = vpack.c.bf16 %v1021_v56, %v1021_v56  ;;  %1103 = vst.msk [vmem:[%s3067_s8 + $0x3c] sm:$0xf] %vm1087_vm6, %v2053_v11  ;;  %v1565_v47 = vmul.f32 %v2396_v42, %v2016_v19  ;;  %vm1646_vm0 = vcmp.eq.f32.partialorder %v3634_v37, 0.0  ;;  %v3812_v19 = vld [vmem:[#allocation11_spill] sm:$0xff]  ;;  %v3813_v11 = vld [vmem:[#allocation14_spill] sm:$0xff] }
 0x22d   : > { %v950_v9 = vsel %vm949_vm13, %v3610_v30, %v948_v50  ;;  %v988_v1 = vmul.f32 %v960_v60, %v3808_v26  ;;  %v1571_v8 = vmul.f32 %v2398_v18, %v2019_v39  ;;  %vm1665_vm2 = vcmp.eq.f32.partialorder %v1567_v48, inf }
 0x22e   : > { %v953_v58 = vsel %vm951_vm14, %v952_v25, %v950_v9  ;;  %v2400_v34 = vpop.eup %2399  ;;  %1102 = vst.msk [vmem:[%s3067_s8 + $0x38] sm:$0xf] %vm1087_vm6, %v2052_v62  ;;  %2405 = vrsqrt.f32 %v1565_v47  ;;  %v1668_v51 = vand.u32 2147483648, %v1567_v48  ;;  %vm1667_vm3 = vcmp.eq.f32.partialorder %v1567_v48, 0.0 }
 0x22f   : > { %v987_v46 = vmul.f32 %v953_v58, %v3809_v52  ;;  %v1020_v24 = vsel %vm329_vm1, %v1004_v2, %v988_v1  ;;  %v2402_v55 = vpop.eup %2401  ;;  %v1643_v30 = vmul.f32 %v2400_v34, %v3634_v37  ;;  %2407 = vrsqrt.f32 %v1571_v8 }
 0x230   : > { %v2051_v22 = vpack.c.bf16 %v1020_v24, %v1020_v24  ;;  %v1569_v31 = vmul.f32 %v2402_v55, %v2018_v5  ;;  %vm1658_vm4 = vcmp.eq.f32.partialorder %v1565_v47, inf  ;;  %v1661_v27 = vand.u32 2147483648, %v1565_v47 }
 0x231   : > { %v1019_v36 = vsel %vm329_vm1, %v1003_v23, %v987_v46  ;;  %v1645_v2 = vsel %vm1644_vm15, %v3634_v37, %v1643_v30  ;;  %vm1660_vm5 = vcmp.eq.f32.partialorder %v1565_v47, 0.0  ;;  %vm1679_vm7 = vcmp.eq.f32.partialorder %v1571_v8, inf }
 0x232   : > { %v2050_v10 = vpack.c.bf16 %v1019_v36, %v1019_v36  ;;  %1101 = vst.msk [vmem:[%s3067_s8 + $0x34] sm:$0xf] %vm1087_vm6, %v2051_v22  ;;  %v1648_v33 = vsel %vm1646_vm0, %v1647_v49, %v1645_v2  ;;  %2409 = vrsqrt.f32 %v1569_v31  ;;  %vm1681_vm8 = vcmp.eq.f32.partialorder %v1571_v8, 0.0 }
 0x233   : > { %v1694_v41 = vmul.f32 %v1648_v33, %v3810_v59  ;;  %vm1672_vm9 = vcmp.eq.f32.partialorder %v1569_v31, inf  ;;  %v1675_v25 = vand.u32 2147483648, %v1569_v31  ;;  %vm1674_vm10 = vcmp.eq.f32.partialorder %v1569_v31, 0.0 }
 0x234   : > { %1100 = vst.msk [vmem:[%s3067_s8 + $0x30] sm:$0xf] %vm1087_vm6, %v2050_v10 }
 0x235   : > { %v1710_v54 = vsel %vm329_vm1, %v3508_v16, %v1694_v41  ;;  %v2404_v21 = vpop.eup %2403 }
 0x236   : > { %v2064_v20 = vpack.c.bf16 %v1710_v54, %v1710_v54  ;;  %v1664_v12 = vmul.f32 %v2404_v21, %v1567_v48 }
 0x238   : > { %1790 = vst.msk [vmem:[%s3054_s28 + $0x28] sm:$0xf] %vm1087_vm6, %v2064_v20  ;;  %v1666_v38 = vsel %vm1665_vm2, %v1567_v48, %v1664_v12  ;;  %v1682_v48 = vand.u32 2147483648, %v1571_v8 }
 0x239   : > { %v1669_v37 = vsel %vm1667_vm3, %v1668_v51, %v1666_v38 }
 0x23a   : > { %v1697_v0 = vmul.f32 %v1669_v37, %v3811_v14 }
 0x23b   : > { %v2406_v53 = vpop.eup %2405 }
 0x23c   : > { %v1657_v7 = vmul.f32 %v2406_v53, %v1565_v47  ;;  %v2408_v28 = vpop.eup %2407  ;;  %v1713_v16 = vsel %vm329_vm1, %v3616_v63, %v1697_v0 }
 0x23d   : > { %v2067_v29 = vpack.c.bf16 %v1713_v16, %v1713_v16  ;;  %v1678_v45 = vmul.f32 %v2408_v28, %v1571_v8 }
 0x23e   : > { %v1659_v4 = vsel %vm1658_vm4, %v1565_v47, %v1657_v7 }
 0x23f   : > { %v1662_v17 = vsel %vm1660_vm5, %v1661_v27, %v1659_v4  ;;  %v2410_v35 = vpop.eup %2409  ;;  %1793 = vst.msk [vmem:[%s3054_s28 + $0x34] sm:$0xf] %vm1087_vm6, %v2067_v29  ;;  %v1680_v6 = vsel %vm1679_vm7, %v1571_v8, %v1678_v45 }
 0x240   : > { %v1696_v40 = vmul.f32 %v1662_v17, %v3812_v19  ;;  %v1683_v32 = vsel %vm1681_vm8, %v1682_v48, %v1680_v6  ;;  %v1671_v63 = vmul.f32 %v2410_v35, %v1569_v31 }
 0x241   : > { %v1699_v50 = vmul.f32 %v1683_v32, %v3813_v11 }
 0x242   : > { %v1712_v44 = vsel %vm329_vm1, %v3643_v57, %v1696_v40  ;;  %v1673_v42 = vsel %vm1672_vm9, %v1569_v31, %v1671_v63 }
 0x243   : > { %v2066_v3 = vpack.c.bf16 %v1712_v44, %v1712_v44  ;;  %v1715_v56 = vsel %vm329_vm1, %v3655_v43, %v1699_v50  ;;  %v1676_v60 = vsel %vm1674_vm10, %v1675_v25, %v1673_v42 }
 0x244   : > { %v2069_v39 = vpack.c.bf16 %v1715_v56, %v1715_v56  ;;  %v1698_v18 = vmul.f32 %v1676_v60, %v3814_v15 }
 0x245   : > { %1792 = vst.msk [vmem:[%s3054_s28 + $0x30] sm:$0xf] %vm1087_vm6, %v2066_v3 }
 0x246   : > { %1795 = vst.msk [vmem:[%s3054_s28 + $0x3c] sm:$0xf] %vm1087_vm6, %v2069_v39  ;;  %v1714_v57 = vsel %vm329_vm1, %v3681_v61, %v1698_v18 }
 0x247   : > { %v2068_v62 = vpack.c.bf16 %v1714_v57, %v1714_v57 }
 0x249   : > { %1794 = vst.msk [vmem:[%s3054_s28 + $0x38] sm:$0xf] %vm1087_vm6, %v2068_v62 }
 0x24a PF: > { %s19_s24 = sadd.s32 1, %s2436_s24  }
 0x24b   : > { %p16_p1 = scmp.ge.s32.totalorder %s19_s24, 6  }
 0x24d   :  { %18 = sbr.rel (!%p16_p1) target bundleno = 1 (0x1), region = 91 }
 0x252   :  { %1835 = vsyncpa [#allocation3], 1 }
 0x253   :  { %1837 = vsyncpa [#allocation3 + $0x1], 1 }

</bundles_post_ra>
